<compile_context>
chip_gen: v5e
topology: v5e:2x2
jax: 0.10.0
libtpu: 0.0.40
codegen_flags: <defaults>
</compile_context>

<pallas_src>
import jax
import jax.numpy as jnp
from jax import lax
from jax.experimental import pallas as pl
from jax.experimental.pallas import tpu as pltpu

_DEFAULT_CHUNK = 32  # timesteps per grid step (fully unrolled in-kernel)


# ----------------------------------------------------------------------------- kernel
def _encoder_gru_chunk_kernel(tok_ref,    # (T_pad,) int32 scalar-prefetch (SMEM)
                              gi_ref,     # (V, 1, 3*Hp) f32: precomputed x@W_ih^T + b_ih per token
                              whh_ref,    # (Hp, 3*Hp)  bf16: W_hh^T (gate-padded), VMEM resident
                              bhh_ref,    # (1, 3*Hp)   f32: b_hh (gate-padded),    VMEM resident
                              h0_ref,     # (1, Hp)     f32: initial hidden,        VMEM resident
                              out_ref,    # (Tc, 1, Hp) f32: per-step hidden/output for this chunk
                              h_scratch): # (1, Hp)     f32 scratch: hidden carried across chunks
    Tc = out_ref.shape[0]
    Hp = h_scratch.shape[-1]
    c = pl.program_id(0)

    @pl.when(c == 0)
    def _():
        h_scratch[...] = h0_ref[...]

    # Hoist constant operands out of the time loop (loaded once per chunk).
    whh = whh_ref[...]                      # (Hp, 3*Hp) bf16
    bhh = bhh_ref[...]                      # (1, 3*Hp)  f32
    h_init = h_scratch[...]                 # (1, Hp)    f32

    def step(i, carry):
        h, h_bf = carry                     # f32 hidden + bf16 shadow feeding the MXU
        tok = tok_ref[c * Tc + i]           # SMEM scalar read
        gi = gi_ref[tok][...]               # (1, 3*Hp) f32, lane-major gather from VMEM table

        # Recurrent gate pre-activations: single 1-row MXU matmul, bf16 in / f32 accumulate.
        gh = jnp.dot(h_bf, whh, preferred_element_type=jnp.float32) + bhh   # (1, 3*Hp)

        # PyTorch GRU semantics (gate order r, z, n; n uses r * (W_hn h + b_hn)).
        # gi and gh share the same lane layout -> plain VPU adds, one fused sigmoid.
        rz = jax.nn.sigmoid(gi[:, 0:2 * Hp] + gh[:, 0:2 * Hp])              # one EUP pass
        r = rz[:, 0:Hp]
        z = rz[:, Hp:2 * Hp]
        n = jnp.tanh(gi[:, 2 * Hp:3 * Hp] + r * gh[:, 2 * Hp:3 * Hp])
        h_new = (1.0 - z) * n + z * h                                       # all f32 elementwise

        out_ref[i] = h_new                                                  # chunk-local writeback
        return h_new, h_new.astype(whh.dtype)

    h_final, _ = lax.fori_loop(0, Tc, step, (h_init, h_init.astype(whh.dtype)),
                               unroll=True)
    h_scratch[...] = h_final


# ----------------------------------------------------------------------------- wrappers
def pack_params(params, whh_dtype=jnp.bfloat16):
    """Precompute the lane-major input-gate table and gate-padded recurrent weights.

    Note: bf16 W_hh rounding compounds over long sequences; pass whh_dtype=jnp.float32
    if accuracy over very long T matters (kernel is latency-, not MXU-throughput-bound).
    """
    emb, wih_t, whh_t = params["embedding"], params["wih_t"], params["whh_t"]
    bih, bhh = params["bih"], params["bhh"]
    V, H = emb.shape
    Hp = max(128, ((H + 127) // 128) * 128)

    # gi[v] = emb[v] @ W_ih^T + b_ih -> (V, 3H); repack lane-major per gate into (V, 1, 3*Hp).
    gi = emb.astype(jnp.float32) @ wih_t.astype(jnp.float32) + bih[None, :]
    gi_tab = jnp.zeros((V, 1, 3 * Hp), jnp.float32)
    whh_pad = jnp.zeros((Hp, 3 * Hp), jnp.float32)
    bhh_pad = jnp.zeros((1, 3 * Hp), jnp.float32)
    for g in range(3):
        gi_tab = gi_tab.at[:, 0, g * Hp:g * Hp + H].set(gi[:, g * H:(g + 1) * H])
        whh_pad = whh_pad.at[:H, g * Hp:g * Hp + H].set(whh_t[:, g * H:(g + 1) * H])
        bhh_pad = bhh_pad.at[0, g * Hp:g * Hp + H].set(bhh[g * H:(g + 1) * H])

    return {
        "gi_table": gi_tab,                      # f32, VMEM-resident (tiny for small V)
        "whh_pad": whh_pad.astype(whh_dtype),    # bf16 storage, f32 accumulate on MXU
        "bhh_pad": bhh_pad,
        "H": H, "Hp": Hp, "V": V,
    }


def encoder_rnn_encode(tokens, hidden, packed, chunk=_DEFAULT_CHUNK):
    """Apply EncoderRNN.forward once per token (one fused pallas_call over all timesteps).

    Returns (outputs, hidden_new): outputs[t] is the (1,1,H) GRU output of step t,
    hidden_new is the (1,1,H) final hidden state.
    """
    gi_tab, whh, bhh = packed["gi_table"], packed["whh_pad"], packed["bhh_pad"]
    H, Hp, V = packed["H"], packed["Hp"], packed["V"]

    tokens = jnp.clip(jnp.asarray(tokens, jnp.int32).reshape(-1), 0, V - 1)
    T = int(tokens.shape[0])
    Tc = T if T <= chunk else chunk
    n_chunks = pl.cdiv(T, Tc)
    T_pad = n_chunks * Tc
    if T_pad != T:
        # Padded steps compute on token 0 and are discarded by the wrapper slice below.
        tokens = jnp.concatenate([tokens, jnp.zeros((T_pad - T,), jnp.int32)])

    h0 = jnp.zeros((1, Hp), jnp.float32)
    h0 = h0.at[:, :H].set(hidden.reshape(1, H).astype(jnp.float32))

    outs = pl.pallas_call(
        _encoder_gru_chunk_kernel,
        out_shape=jax.ShapeDtypeStruct((T_pad, 1, Hp), jnp.float32),
        grid_spec=pltpu.PrefetchScalarGridSpec(
            num_scalar_prefetch=1,          # token ids -> SMEM, read per step in-kernel
            grid=(n_chunks,),
            in_specs=[
                # Whole gi table VMEM-resident (constant index_map); rows gathered in-kernel.
                pl.BlockSpec((V, 1, 3 * Hp), lambda c, toks: (0, 0, 0)),
                # Recurrent weights / bias / h0: constant index_map => VMEM-resident.
                pl.BlockSpec((Hp, 3 * Hp), lambda c, toks: (0, 0)),
                pl.BlockSpec((1, 3 * Hp), lambda c, toks: (0, 0)),
                pl.BlockSpec((1, Hp), lambda c, toks: (0, 0)),
            ],
            out_specs=pl.BlockSpec((Tc, 1, Hp), lambda c, toks: (c, 0, 0)),
            scratch_shapes=[pltpu.VMEM((1, Hp), jnp.float32)],
        ),
        compiler_params=pltpu.CompilerParams(
            # Sequential recurrence over chunks of timesteps.
            dimension_semantics=("arbitrary",),
        ),
    )(tokens, gi_tab, whh, bhh, h0)

    outputs = outs[:T, 0, :H].reshape(T, 1, 1, H)
    hidden_new = outs[T - 1, 0, :H].reshape(1, 1, H)
    return outputs, hidden_new


def encoder_rnn_forward(token, hidden, packed):
    """Exact EncoderRNN.forward: one token, one step -> (output, hidden), each (1,1,H)."""
    outputs, hidden_new = encoder_rnn_encode(jnp.asarray(token, jnp.int32).reshape((1,)),
                                             hidden, packed)
    return outputs[0], hidden_new


# ----------------------------------------------------------------------------- reference & init
def encoder_rnn_reference(tokens, hidden, params):
    """Pure-JAX f32 reference (PyTorch GRU math), one step per token."""
    emb, wih_t, whh_t = params["embedding"], params["wih_t"], params["whh_t"]
    bih, bhh = params["bih"], params["bhh"]
    H = hidden.shape[-1]
    h = hidden.reshape(1, H).astype(jnp.float32)
    outs = []
    for tok in list(tokens):
        x = emb[tok][None, :]
        gi = x @ wih_t + bih[None, :]
        gh = h @ whh_t + bhh[None, :]
        i_r, i_z, i_n = gi[:, :H], gi[:, H:2 * H], gi[:, 2 * H:]
        h_r, h_z, h_n = gh[:, :H], gh[:, H:2 * H], gh[:, 2 * H:]
        r = jax.nn.sigmoid(i_r + h_r)
        z = jax.nn.sigmoid(i_z + h_z)
        n = jnp.tanh(i_n + r * h_n)
        h = (1.0 - z) * n + z * h
        outs.append(h)
    return jnp.stack(outs), h


def init_params(key, input_size, hidden_size):
    """Synthetic parameters with nn.Embedding / nn.GRU shapes (weights stored transposed)."""
    H = hidden_size
    k_emb, k_wih, k_whh, k_bih, k_bhh = jax.random.split(key, 5)
    scale = 1.0 / jnp.sqrt(H)
    return {
        "embedding": jax.random.normal(k_emb, (input_size, H), jnp.float32),   # (V, H)
        "wih_t": jax.random.uniform(k_wih, (H, 3 * H), jnp.float32, -scale, scale),
        "whh_t": jax.random.uniform(k_whh, (H, 3 * H), jnp.float32, -scale, scale),
        "bih": jax.random.uniform(k_bih, (3 * H,), jnp.float32, -scale, scale),
        "bhh": jax.random.uniform(k_bhh, (3 * H,), jnp.float32, -scale, scale),
    }


def init_hidden(hidden_size):
    return jnp.zeros((1, 1, hidden_size), jnp.float32)


if __name__ == "__main__":
    INPUT_SIZE = 50    # vocabulary size
    HIDDEN_SIZE = 32
    SEQ_LEN = 8

    key = jax.random.PRNGKey(0)
    params = init_params(key, INPUT_SIZE, HIDDEN_SIZE)
    packed = pack_params(params)

    tokens = jax.random.randint(jax.random.PRNGKey(1), (SEQ_LEN,), 0, INPUT_SIZE, jnp.int32)
    hidden = init_hidden(HIDDEN_SIZE)

    # Fused sequence of forward() steps: one pallas_call, in-kernel loop over timesteps.
    outputs, new_hidden = encoder_rnn_encode(tokens, hidden, packed)
    jax.block_until_ready((outputs, new_hidden))
    assert outputs.shape == (SEQ_LEN, 1, 1, HIDDEN_SIZE)
    assert new_hidden.shape == (1, 1, HIDDEN_SIZE)

    # Single-step forward, exactly matching EncoderRNN.forward signature/shapes.
    out1, h1 = encoder_rnn_forward(tokens[0], hidden, packed)
    jax.block_until_ready((out1, h1))
    assert out1.shape == (1, 1, HIDDEN_SIZE) and h1.shape == (1, 1, HIDDEN_SIZE)

    # Numerical check against the pure-JAX f32 reference (bf16 recurrent weights => loose tol).
    ref_outs, ref_h = encoder_rnn_reference(tokens, hidden, params)
    assert jnp.allclose(outputs.reshape(SEQ_LEN, HIDDEN_SIZE),
                        ref_outs.reshape(SEQ_LEN, HIDDEN_SIZE), atol=5e-2, rtol=5e-2)
    assert jnp.allclose(new_hidden.reshape(-1), ref_h.reshape(-1), atol=5e-2, rtol=5e-2)
    assert jnp.allclose(out1.reshape(-1), ref_outs[0].reshape(-1), atol=5e-2, rtol=5e-2)

    print("KERNEL_OK")
</pallas_src>

<mosaic_0001>
module attributes {stable_mosaic.version = 11 : i64} {
  func.func @_encoder_gru_chunk_kernel(%arg0: i32, %arg1: memref<8xi32, #tpu.memory_space<smem>>, %arg2: memref<50x1x384xf32, #tpu.memory_space<vmem>>, %arg3: memref<128x384xbf16, #tpu.memory_space<vmem>>, %arg4: memref<1x384xf32, #tpu.memory_space<vmem>>, %arg5: memref<1x128xf32, #tpu.memory_space<vmem>>, %arg6: memref<8x1x128xf32, #tpu.memory_space<vmem>>, %arg7: memref<1x128xf32, #tpu.memory_space<vmem>>) attributes {dimension_semantics = [#tpu.dimension_semantics<arbitrary>], iteration_bounds = array<i64: 1>, scalar_prefetch = 1 : i64, scratch_operands = 1 : i64, tpu.core_type = #tpu.core_type<tc>, window_params = [{pipeline_mode = #tpu.pipeline_mode<synchronous>, transform_indices = @transform_0, window_bounds = array<i64: 50, 1, 384>}, {pipeline_mode = #tpu.pipeline_mode<synchronous>, transform_indices = @transform_1, window_bounds = array<i64: 128, 384>}, {pipeline_mode = #tpu.pipeline_mode<synchronous>, transform_indices = @transform_2, window_bounds = array<i64: 1, 384>}, {pipeline_mode = #tpu.pipeline_mode<synchronous>, transform_indices = @transform_3, window_bounds = array<i64: 1, 128>}, {transform_indices = @transform_4, window_bounds = array<i64: 8, 1, 128>}]} {
    %c0_i32 = arith.constant 0 : i32
    %0 = arith.cmpi eq, %arg0, %c0_i32 : i32
    %1 = arith.extui %0 : i1 to i32
    %c0_i32_0 = arith.constant 0 : i32
    %2 = arith.cmpi ne, %1, %c0_i32_0 : i32
    scf.if %2 {
      %c0_72 = arith.constant 0 : index
      %c0_73 = arith.constant 0 : index
      %280 = vector.load %arg5[%c0_72, %c0_73] : memref<1x128xf32, #tpu.memory_space<vmem>>, vector<1x128xf32>
      %c0_74 = arith.constant 0 : index
      %c0_75 = arith.constant 0 : index
      %281 = vector.load %arg7[%c0_74, %c0_75] : memref<1x128xf32, #tpu.memory_space<vmem>>, vector<1x128xf32>
      tpu.vector_store %arg7[%c0_74, %c0_75], %280 {strides = array<i32>} : memref<1x128xf32, #tpu.memory_space<vmem>>, vector<1x128xf32>,
    } else {
    }
    %c0 = arith.constant 0 : index
    %c0_1 = arith.constant 0 : index
    %3 = vector.load %arg3[%c0, %c0_1] : memref<128x384xbf16, #tpu.memory_space<vmem>>, vector<128x384xbf16>
    %c0_2 = arith.constant 0 : index
    %c0_3 = arith.constant 0 : index
    %4 = vector.load %arg4[%c0_2, %c0_3] : memref<1x384xf32, #tpu.memory_space<vmem>>, vector<1x384xf32>
    %c0_4 = arith.constant 0 : index
    %c0_5 = arith.constant 0 : index
    %5 = vector.load %arg7[%c0_4, %c0_5] : memref<1x128xf32, #tpu.memory_space<vmem>>, vector<1x128xf32>
    %6 = arith.truncf %5 : vector<1x128xf32> to vector<1x128xbf16>
    %c0_i32_6 = arith.constant 0 : i32
    %c8_i32 = arith.constant 8 : i32
    %7 = arith.muli %arg0, %c8_i32 : i32
    %8 = arith.addi %7, %c0_i32_6 : i32
    %9 = arith.index_cast %8 : i32 to index
    %10 = memref.load %arg1[%9] : memref<8xi32, #tpu.memory_space<smem>>
    %11 = arith.index_cast %10 : i32 to index
    %c0_7 = arith.constant 0 : index
    %c0_8 = arith.constant 0 : index
    %12 = vector.load %arg2[%11, %c0_7, %c0_8] : memref<50x1x384xf32, #tpu.memory_space<vmem>>, vector<1x1x384xf32>
    %13 = vector.shape_cast %12 : vector<1x1x384xf32> to vector<1x384xf32>
    %cst = arith.constant dense<0.000000e+00> : vector<1x384xf32>
    %14 = tpu.matmul %6, %3, %cst {dimension_numbers = #tpu.dot_dimension_numbers<[1], [0], [0], [1], [0, 0, 1, 1], [], []>} : vector<1x128xbf16>, vector<128x384xbf16>, vector<1x384xf32> -> vector<1x384xf32>
    %15 = arith.addf %14, %4 : vector<1x384xf32>
    %16 = vector.extract_strided_slice %13 {offsets = [0, 0], sizes = [1, 256], strides = [1, 1]} : vector<1x384xf32> to vector<1x256xf32>
    %17 = vector.extract_strided_slice %15 {offsets = [0, 0], sizes = [1, 256], strides = [1, 1]} : vector<1x384xf32> to vector<1x256xf32>
    %18 = arith.addf %16, %17 : vector<1x256xf32>
    %19 = arith.negf %18 : vector<1x256xf32>
    %20 = math.exp %19 : vector<1x256xf32>
    %cst_9 = arith.constant 1.000000e+00 : f32
    %21 = vector.broadcast %cst_9 : f32 to vector<1x256xf32>
    %22 = arith.addf %21, %20 : vector<1x256xf32>
    %23 = arith.divf %21, %22 : vector<1x256xf32>
    %24 = vector.extract_strided_slice %23 {offsets = [0, 0], sizes = [1, 128], strides = [1, 1]} : vector<1x256xf32> to vector<1x128xf32>
    %25 = vector.extract_strided_slice %23 {offsets = [0, 128], sizes = [1, 128], strides = [1, 1]} : vector<1x256xf32> to vector<1x128xf32>
    %26 = vector.extract_strided_slice %13 {offsets = [0, 256], sizes = [1, 128], strides = [1, 1]} : vector<1x384xf32> to vector<1x128xf32>
    %27 = vector.extract_strided_slice %15 {offsets = [0, 256], sizes = [1, 128], strides = [1, 1]} : vector<1x384xf32> to vector<1x128xf32>
    %28 = arith.mulf %24, %27 : vector<1x128xf32>
    %29 = arith.addf %26, %28 : vector<1x128xf32>
    %30 = math.tanh %29 : vector<1x128xf32>
    %cst_10 = arith.constant 1.000000e+00 : f32
    %31 = vector.broadcast %cst_10 : f32 to vector<1x128xf32>
    %32 = arith.subf %31, %25 : vector<1x128xf32>
    %33 = arith.mulf %32, %30 : vector<1x128xf32>
    %34 = arith.mulf %25, %5 : vector<1x128xf32>
    %35 = arith.addf %33, %34 : vector<1x128xf32>
    %36 = arith.index_cast %c0_i32_6 : i32 to index
    %c0_11 = arith.constant 0 : index
    %c0_12 = arith.constant 0 : index
    %37 = vector.load %arg6[%36, %c0_11, %c0_12] : memref<8x1x128xf32, #tpu.memory_space<vmem>>, vector<1x1x128xf32>
    %38 = vector.shape_cast %37 : vector<1x1x128xf32> to vector<1x128xf32>
    %39 = vector.shape_cast %35 : vector<1x128xf32> to vector<1x1x128xf32>
    tpu.vector_store %arg6[%36, %c0_11, %c0_12], %39 {strides = array<i32>} : memref<8x1x128xf32, #tpu.memory_space<vmem>>, vector<1x1x128xf32>,
    %40 = arith.truncf %35 : vector<1x128xf32> to vector<1x128xbf16>
    %c1_i32 = arith.constant 1 : i32
    %c8_i32_13 = arith.constant 8 : i32
    %41 = arith.muli %arg0, %c8_i32_13 : i32
    %42 = arith.addi %41, %c1_i32 : i32
    %43 = arith.index_cast %42 : i32 to index
    %44 = memref.load %arg1[%43] : memref<8xi32, #tpu.memory_space<smem>>
    %45 = arith.index_cast %44 : i32 to index
    %c0_14 = arith.constant 0 : index
    %c0_15 = arith.constant 0 : index
    %46 = vector.load %arg2[%45, %c0_14, %c0_15] : memref<50x1x384xf32, #tpu.memory_space<vmem>>, vector<1x1x384xf32>
    %47 = vector.shape_cast %46 : vector<1x1x384xf32> to vector<1x384xf32>
    %cst_16 = arith.constant dense<0.000000e+00> : vector<1x384xf32>
    %48 = tpu.matmul %40, %3, %cst_16 {dimension_numbers = #tpu.dot_dimension_numbers<[1], [0], [0], [1], [0, 0, 1, 1], [], []>} : vector<1x128xbf16>, vector<128x384xbf16>, vector<1x384xf32> -> vector<1x384xf32>
    %49 = arith.addf %48, %4 : vector<1x384xf32>
    %50 = vector.extract_strided_slice %47 {offsets = [0, 0], sizes = [1, 256], strides = [1, 1]} : vector<1x384xf32> to vector<1x256xf32>
    %51 = vector.extract_strided_slice %49 {offsets = [0, 0], sizes = [1, 256], strides = [1, 1]} : vector<1x384xf32> to vector<1x256xf32>
    %52 = arith.addf %50, %51 : vector<1x256xf32>
    %53 = arith.negf %52 : vector<1x256xf32>
    %54 = math.exp %53 : vector<1x256xf32>
    %cst_17 = arith.constant 1.000000e+00 : f32
    %55 = vector.broadcast %cst_17 : f32 to vector<1x256xf32>
    %56 = arith.addf %55, %54 : vector<1x256xf32>
    %57 = arith.divf %55, %56 : vector<1x256xf32>
    %58 = vector.extract_strided_slice %57 {offsets = [0, 0], sizes = [1, 128], strides = [1, 1]} : vector<1x256xf32> to vector<1x128xf32>
    %59 = vector.extract_strided_slice %57 {offsets = [0, 128], sizes = [1, 128], strides = [1, 1]} : vector<1x256xf32> to vector<1x128xf32>
    %60 = vector.extract_strided_slice %47 {offsets = [0, 256], sizes = [1, 128], strides = [1, 1]} : vector<1x384xf32> to vector<1x128xf32>
    %61 = vector.extract_strided_slice %49 {offsets = [0, 256], sizes = [1, 128], strides = [1, 1]} : vector<1x384xf32> to vector<1x128xf32>
    %62 = arith.mulf %58, %61 : vector<1x128xf32>
    %63 = arith.addf %60, %62 : vector<1x128xf32>
    %64 = math.tanh %63 : vector<1x128xf32>
    %cst_18 = arith.constant 1.000000e+00 : f32
    %65 = vector.broadcast %cst_18 : f32 to vector<1x128xf32>
    %66 = arith.subf %65, %59 : vector<1x128xf32>
    %67 = arith.mulf %66, %64 : vector<1x128xf32>
    %68 = arith.mulf %59, %35 : vector<1x128xf32>
    %69 = arith.addf %67, %68 : vector<1x128xf32>
    %70 = arith.index_cast %c1_i32 : i32 to index
    %c0_19 = arith.constant 0 : index
    %c0_20 = arith.constant 0 : index
    %71 = vector.load %arg6[%70, %c0_19, %c0_20] : memref<8x1x128xf32, #tpu.memory_space<vmem>>, vector<1x1x128xf32>
    %72 = vector.shape_cast %71 : vector<1x1x128xf32> to vector<1x128xf32>
    %73 = vector.shape_cast %69 : vector<1x128xf32> to vector<1x1x128xf32>
    tpu.vector_store %arg6[%70, %c0_19, %c0_20], %73 {strides = array<i32>} : memref<8x1x128xf32, #tpu.memory_space<vmem>>, vector<1x1x128xf32>,
    %74 = arith.truncf %69 : vector<1x128xf32> to vector<1x128xbf16>
    %c2_i32 = arith.constant 2 : i32
    %c8_i32_21 = arith.constant 8 : i32
    %75 = arith.muli %arg0, %c8_i32_21 : i32
    %76 = arith.addi %75, %c2_i32 : i32
    %77 = arith.index_cast %76 : i32 to index
    %78 = memref.load %arg1[%77] : memref<8xi32, #tpu.memory_space<smem>>
    %79 = arith.index_cast %78 : i32 to index
    %c0_22 = arith.constant 0 : index
    %c0_23 = arith.constant 0 : index
    %80 = vector.load %arg2[%79, %c0_22, %c0_23] : memref<50x1x384xf32, #tpu.memory_space<vmem>>, vector<1x1x384xf32>
    %81 = vector.shape_cast %80 : vector<1x1x384xf32> to vector<1x384xf32>
    %cst_24 = arith.constant dense<0.000000e+00> : vector<1x384xf32>
    %82 = tpu.matmul %74, %3, %cst_24 {dimension_numbers = #tpu.dot_dimension_numbers<[1], [0], [0], [1], [0, 0, 1, 1], [], []>} : vector<1x128xbf16>, vector<128x384xbf16>, vector<1x384xf32> -> vector<1x384xf32>
    %83 = arith.addf %82, %4 : vector<1x384xf32>
    %84 = vector.extract_strided_slice %81 {offsets = [0, 0], sizes = [1, 256], strides = [1, 1]} : vector<1x384xf32> to vector<1x256xf32>
    %85 = vector.extract_strided_slice %83 {offsets = [0, 0], sizes = [1, 256], strides = [1, 1]} : vector<1x384xf32> to vector<1x256xf32>
    %86 = arith.addf %84, %85 : vector<1x256xf32>
    %87 = arith.negf %86 : vector<1x256xf32>
    %88 = math.exp %87 : vector<1x256xf32>
    %cst_25 = arith.constant 1.000000e+00 : f32
    %89 = vector.broadcast %cst_25 : f32 to vector<1x256xf32>
    %90 = arith.addf %89, %88 : vector<1x256xf32>
    %91 = arith.divf %89, %90 : vector<1x256xf32>
    %92 = vector.extract_strided_slice %91 {offsets = [0, 0], sizes = [1, 128], strides = [1, 1]} : vector<1x256xf32> to vector<1x128xf32>
    %93 = vector.extract_strided_slice %91 {offsets = [0, 128], sizes = [1, 128], strides = [1, 1]} : vector<1x256xf32> to vector<1x128xf32>
    %94 = vector.extract_strided_slice %81 {offsets = [0, 256], sizes = [1, 128], strides = [1, 1]} : vector<1x384xf32> to vector<1x128xf32>
    %95 = vector.extract_strided_slice %83 {offsets = [0, 256], sizes = [1, 128], strides = [1, 1]} : vector<1x384xf32> to vector<1x128xf32>
    %96 = arith.mulf %92, %95 : vector<1x128xf32>
    %97 = arith.addf %94, %96 : vector<1x128xf32>
    %98 = math.tanh %97 : vector<1x128xf32>
    %cst_26 = arith.constant 1.000000e+00 : f32
    %99 = vector.broadcast %cst_26 : f32 to vector<1x128xf32>
    %100 = arith.subf %99, %93 : vector<1x128xf32>
    %101 = arith.mulf %100, %98 : vector<1x128xf32>
    %102 = arith.mulf %93, %69 : vector<1x128xf32>
    %103 = arith.addf %101, %102 : vector<1x128xf32>
    %104 = arith.index_cast %c2_i32 : i32 to index
    %c0_27 = arith.constant 0 : index
    %c0_28 = arith.constant 0 : index
    %105 = vector.load %arg6[%104, %c0_27, %c0_28] : memref<8x1x128xf32, #tpu.memory_space<vmem>>, vector<1x1x128xf32>
    %106 = vector.shape_cast %105 : vector<1x1x128xf32> to vector<1x128xf32>
    %107 = vector.shape_cast %103 : vector<1x128xf32> to vector<1x1x128xf32>
    tpu.vector_store %arg6[%104, %c0_27, %c0_28], %107 {strides = array<i32>} : memref<8x1x128xf32, #tpu.memory_space<vmem>>, vector<1x1x128xf32>,
    %108 = arith.truncf %103 : vector<1x128xf32> to vector<1x128xbf16>
    %c3_i32 = arith.constant 3 : i32
    %c8_i32_29 = arith.constant 8 : i32
    %109 = arith.muli %arg0, %c8_i32_29 : i32
    %110 = arith.addi %109, %c3_i32 : i32
    %111 = arith.index_cast %110 : i32 to index
    %112 = memref.load %arg1[%111] : memref<8xi32, #tpu.memory_space<smem>>
    %113 = arith.index_cast %112 : i32 to index
    %c0_30 = arith.constant 0 : index
    %c0_31 = arith.constant 0 : index
    %114 = vector.load %arg2[%113, %c0_30, %c0_31] : memref<50x1x384xf32, #tpu.memory_space<vmem>>, vector<1x1x384xf32>
    %115 = vector.shape_cast %114 : vector<1x1x384xf32> to vector<1x384xf32>
    %cst_32 = arith.constant dense<0.000000e+00> : vector<1x384xf32>
    %116 = tpu.matmul %108, %3, %cst_32 {dimension_numbers = #tpu.dot_dimension_numbers<[1], [0], [0], [1], [0, 0, 1, 1], [], []>} : vector<1x128xbf16>, vector<128x384xbf16>, vector<1x384xf32> -> vector<1x384xf32>
    %117 = arith.addf %116, %4 : vector<1x384xf32>
    %118 = vector.extract_strided_slice %115 {offsets = [0, 0], sizes = [1, 256], strides = [1, 1]} : vector<1x384xf32> to vector<1x256xf32>
    %119 = vector.extract_strided_slice %117 {offsets = [0, 0], sizes = [1, 256], strides = [1, 1]} : vector<1x384xf32> to vector<1x256xf32>
    %120 = arith.addf %118, %119 : vector<1x256xf32>
    %121 = arith.negf %120 : vector<1x256xf32>
    %122 = math.exp %121 : vector<1x256xf32>
    %cst_33 = arith.constant 1.000000e+00 : f32
    %123 = vector.broadcast %cst_33 : f32 to vector<1x256xf32>
    %124 = arith.addf %123, %122 : vector<1x256xf32>
    %125 = arith.divf %123, %124 : vector<1x256xf32>
    %126 = vector.extract_strided_slice %125 {offsets = [0, 0], sizes = [1, 128], strides = [1, 1]} : vector<1x256xf32> to vector<1x128xf32>
    %127 = vector.extract_strided_slice %125 {offsets = [0, 128], sizes = [1, 128], strides = [1, 1]} : vector<1x256xf32> to vector<1x128xf32>
    %128 = vector.extract_strided_slice %115 {offsets = [0, 256], sizes = [1, 128], strides = [1, 1]} : vector<1x384xf32> to vector<1x128xf32>
    %129 = vector.extract_strided_slice %117 {offsets = [0, 256], sizes = [1, 128], strides = [1, 1]} : vector<1x384xf32> to vector<1x128xf32>
    %130 = arith.mulf %126, %129 : vector<1x128xf32>
    %131 = arith.addf %128, %130 : vector<1x128xf32>
    %132 = math.tanh %131 : vector<1x128xf32>
    %cst_34 = arith.constant 1.000000e+00 : f32
    %133 = vector.broadcast %cst_34 : f32 to vector<1x128xf32>
    %134 = arith.subf %133, %127 : vector<1x128xf32>
    %135 = arith.mulf %134, %132 : vector<1x128xf32>
    %136 = arith.mulf %127, %103 : vector<1x128xf32>
    %137 = arith.addf %135, %136 : vector<1x128xf32>
    %138 = arith.index_cast %c3_i32 : i32 to index
    %c0_35 = arith.constant 0 : index
    %c0_36 = arith.constant 0 : index
    %139 = vector.load %arg6[%138, %c0_35, %c0_36] : memref<8x1x128xf32, #tpu.memory_space<vmem>>, vector<1x1x128xf32>
    %140 = vector.shape_cast %139 : vector<1x1x128xf32> to vector<1x128xf32>
    %141 = vector.shape_cast %137 : vector<1x128xf32> to vector<1x1x128xf32>
    tpu.vector_store %arg6[%138, %c0_35, %c0_36], %141 {strides = array<i32>} : memref<8x1x128xf32, #tpu.memory_space<vmem>>, vector<1x1x128xf32>,
    %142 = arith.truncf %137 : vector<1x128xf32> to vector<1x128xbf16>
    %c4_i32 = arith.constant 4 : i32
    %c8_i32_37 = arith.constant 8 : i32
    %143 = arith.muli %arg0, %c8_i32_37 : i32
    %144 = arith.addi %143, %c4_i32 : i32
    %145 = arith.index_cast %144 : i32 to index
    %146 = memref.load %arg1[%145] : memref<8xi32, #tpu.memory_space<smem>>
    %147 = arith.index_cast %146 : i32 to index
    %c0_38 = arith.constant 0 : index
    %c0_39 = arith.constant 0 : index
    %148 = vector.load %arg2[%147, %c0_38, %c0_39] : memref<50x1x384xf32, #tpu.memory_space<vmem>>, vector<1x1x384xf32>
    %149 = vector.shape_cast %148 : vector<1x1x384xf32> to vector<1x384xf32>
    %cst_40 = arith.constant dense<0.000000e+00> : vector<1x384xf32>
    %150 = tpu.matmul %142, %3, %cst_40 {dimension_numbers = #tpu.dot_dimension_numbers<[1], [0], [0], [1], [0, 0, 1, 1], [], []>} : vector<1x128xbf16>, vector<128x384xbf16>, vector<1x384xf32> -> vector<1x384xf32>
    %151 = arith.addf %150, %4 : vector<1x384xf32>
    %152 = vector.extract_strided_slice %149 {offsets = [0, 0], sizes = [1, 256], strides = [1, 1]} : vector<1x384xf32> to vector<1x256xf32>
    %153 = vector.extract_strided_slice %151 {offsets = [0, 0], sizes = [1, 256], strides = [1, 1]} : vector<1x384xf32> to vector<1x256xf32>
    %154 = arith.addf %152, %153 : vector<1x256xf32>
    %155 = arith.negf %154 : vector<1x256xf32>
    %156 = math.exp %155 : vector<1x256xf32>
    %cst_41 = arith.constant 1.000000e+00 : f32
    %157 = vector.broadcast %cst_41 : f32 to vector<1x256xf32>
    %158 = arith.addf %157, %156 : vector<1x256xf32>
    %159 = arith.divf %157, %158 : vector<1x256xf32>
    %160 = vector.extract_strided_slice %159 {offsets = [0, 0], sizes = [1, 128], strides = [1, 1]} : vector<1x256xf32> to vector<1x128xf32>
    %161 = vector.extract_strided_slice %159 {offsets = [0, 128], sizes = [1, 128], strides = [1, 1]} : vector<1x256xf32> to vector<1x128xf32>
    %162 = vector.extract_strided_slice %149 {offsets = [0, 256], sizes = [1, 128], strides = [1, 1]} : vector<1x384xf32> to vector<1x128xf32>
    %163 = vector.extract_strided_slice %151 {offsets = [0, 256], sizes = [1, 128], strides = [1, 1]} : vector<1x384xf32> to vector<1x128xf32>
    %164 = arith.mulf %160, %163 : vector<1x128xf32>
    %165 = arith.addf %162, %164 : vector<1x128xf32>
    %166 = math.tanh %165 : vector<1x128xf32>
    %cst_42 = arith.constant 1.000000e+00 : f32
    %167 = vector.broadcast %cst_42 : f32 to vector<1x128xf32>
    %168 = arith.subf %167, %161 : vector<1x128xf32>
    %169 = arith.mulf %168, %166 : vector<1x128xf32>
    %170 = arith.mulf %161, %137 : vector<1x128xf32>
    %171 = arith.addf %169, %170 : vector<1x128xf32>
    %172 = arith.index_cast %c4_i32 : i32 to index
    %c0_43 = arith.constant 0 : index
    %c0_44 = arith.constant 0 : index
    %173 = vector.load %arg6[%172, %c0_43, %c0_44] : memref<8x1x128xf32, #tpu.memory_space<vmem>>, vector<1x1x128xf32>
    %174 = vector.shape_cast %173 : vector<1x1x128xf32> to vector<1x128xf32>
    %175 = vector.shape_cast %171 : vector<1x128xf32> to vector<1x1x128xf32>
    tpu.vector_store %arg6[%172, %c0_43, %c0_44], %175 {strides = array<i32>} : memref<8x1x128xf32, #tpu.memory_space<vmem>>, vector<1x1x128xf32>,
    %176 = arith.truncf %171 : vector<1x128xf32> to vector<1x128xbf16>
    %c5_i32 = arith.constant 5 : i32
    %c8_i32_45 = arith.constant 8 : i32
    %177 = arith.muli %arg0, %c8_i32_45 : i32
    %178 = arith.addi %177, %c5_i32 : i32
    %179 = arith.index_cast %178 : i32 to index
    %180 = memref.load %arg1[%179] : memref<8xi32, #tpu.memory_space<smem>>
    %181 = arith.index_cast %180 : i32 to index
    %c0_46 = arith.constant 0 : index
    %c0_47 = arith.constant 0 : index
    %182 = vector.load %arg2[%181, %c0_46, %c0_47] : memref<50x1x384xf32, #tpu.memory_space<vmem>>, vector<1x1x384xf32>
    %183 = vector.shape_cast %182 : vector<1x1x384xf32> to vector<1x384xf32>
    %cst_48 = arith.constant dense<0.000000e+00> : vector<1x384xf32>
    %184 = tpu.matmul %176, %3, %cst_48 {dimension_numbers = #tpu.dot_dimension_numbers<[1], [0], [0], [1], [0, 0, 1, 1], [], []>} : vector<1x128xbf16>, vector<128x384xbf16>, vector<1x384xf32> -> vector<1x384xf32>
    %185 = arith.addf %184, %4 : vector<1x384xf32>
    %186 = vector.extract_strided_slice %183 {offsets = [0, 0], sizes = [1, 256], strides = [1, 1]} : vector<1x384xf32> to vector<1x256xf32>
    %187 = vector.extract_strided_slice %185 {offsets = [0, 0], sizes = [1, 256], strides = [1, 1]} : vector<1x384xf32> to vector<1x256xf32>
    %188 = arith.addf %186, %187 : vector<1x256xf32>
    %189 = arith.negf %188 : vector<1x256xf32>
    %190 = math.exp %189 : vector<1x256xf32>
    %cst_49 = arith.constant 1.000000e+00 : f32
    %191 = vector.broadcast %cst_49 : f32 to vector<1x256xf32>
    %192 = arith.addf %191, %190 : vector<1x256xf32>
    %193 = arith.divf %191, %192 : vector<1x256xf32>
    %194 = vector.extract_strided_slice %193 {offsets = [0, 0], sizes = [1, 128], strides = [1, 1]} : vector<1x256xf32> to vector<1x128xf32>
    %195 = vector.extract_strided_slice %193 {offsets = [0, 128], sizes = [1, 128], strides = [1, 1]} : vector<1x256xf32> to vector<1x128xf32>
    %196 = vector.extract_strided_slice %183 {offsets = [0, 256], sizes = [1, 128], strides = [1, 1]} : vector<1x384xf32> to vector<1x128xf32>
    %197 = vector.extract_strided_slice %185 {offsets = [0, 256], sizes = [1, 128], strides = [1, 1]} : vector<1x384xf32> to vector<1x128xf32>
    %198 = arith.mulf %194, %197 : vector<1x128xf32>
    %199 = arith.addf %196, %198 : vector<1x128xf32>
    %200 = math.tanh %199 : vector<1x128xf32>
    %cst_50 = arith.constant 1.000000e+00 : f32
    %201 = vector.broadcast %cst_50 : f32 to vector<1x128xf32>
    %202 = arith.subf %201, %195 : vector<1x128xf32>
    %203 = arith.mulf %202, %200 : vector<1x128xf32>
    %204 = arith.mulf %195, %171 : vector<1x128xf32>
    %205 = arith.addf %203, %204 : vector<1x128xf32>
    %206 = arith.index_cast %c5_i32 : i32 to index
    %c0_51 = arith.constant 0 : index
    %c0_52 = arith.constant 0 : index
    %207 = vector.load %arg6[%206, %c0_51, %c0_52] : memref<8x1x128xf32, #tpu.memory_space<vmem>>, vector<1x1x128xf32>
    %208 = vector.shape_cast %207 : vector<1x1x128xf32> to vector<1x128xf32>
    %209 = vector.shape_cast %205 : vector<1x128xf32> to vector<1x1x128xf32>
    tpu.vector_store %arg6[%206, %c0_51, %c0_52], %209 {strides = array<i32>} : memref<8x1x128xf32, #tpu.memory_space<vmem>>, vector<1x1x128xf32>,
    %210 = arith.truncf %205 : vector<1x128xf32> to vector<1x128xbf16>
    %c6_i32 = arith.constant 6 : i32
    %c8_i32_53 = arith.constant 8 : i32
    %211 = arith.muli %arg0, %c8_i32_53 : i32
    %212 = arith.addi %211, %c6_i32 : i32
    %213 = arith.index_cast %212 : i32 to index
    %214 = memref.load %arg1[%213] : memref<8xi32, #tpu.memory_space<smem>>
    %215 = arith.index_cast %214 : i32 to index
    %c0_54 = arith.constant 0 : index
    %c0_55 = arith.constant 0 : index
    %216 = vector.load %arg2[%215, %c0_54, %c0_55] : memref<50x1x384xf32, #tpu.memory_space<vmem>>, vector<1x1x384xf32>
    %217 = vector.shape_cast %216 : vector<1x1x384xf32> to vector<1x384xf32>
    %cst_56 = arith.constant dense<0.000000e+00> : vector<1x384xf32>
    %218 = tpu.matmul %210, %3, %cst_56 {dimension_numbers = #tpu.dot_dimension_numbers<[1], [0], [0], [1], [0, 0, 1, 1], [], []>} : vector<1x128xbf16>, vector<128x384xbf16>, vector<1x384xf32> -> vector<1x384xf32>
    %219 = arith.addf %218, %4 : vector<1x384xf32>
    %220 = vector.extract_strided_slice %217 {offsets = [0, 0], sizes = [1, 256], strides = [1, 1]} : vector<1x384xf32> to vector<1x256xf32>
    %221 = vector.extract_strided_slice %219 {offsets = [0, 0], sizes = [1, 256], strides = [1, 1]} : vector<1x384xf32> to vector<1x256xf32>
    %222 = arith.addf %220, %221 : vector<1x256xf32>
    %223 = arith.negf %222 : vector<1x256xf32>
    %224 = math.exp %223 : vector<1x256xf32>
    %cst_57 = arith.constant 1.000000e+00 : f32
    %225 = vector.broadcast %cst_57 : f32 to vector<1x256xf32>
    %226 = arith.addf %225, %224 : vector<1x256xf32>
    %227 = arith.divf %225, %226 : vector<1x256xf32>
    %228 = vector.extract_strided_slice %227 {offsets = [0, 0], sizes = [1, 128], strides = [1, 1]} : vector<1x256xf32> to vector<1x128xf32>
    %229 = vector.extract_strided_slice %227 {offsets = [0, 128], sizes = [1, 128], strides = [1, 1]} : vector<1x256xf32> to vector<1x128xf32>
    %230 = vector.extract_strided_slice %217 {offsets = [0, 256], sizes = [1, 128], strides = [1, 1]} : vector<1x384xf32> to vector<1x128xf32>
    %231 = vector.extract_strided_slice %219 {offsets = [0, 256], sizes = [1, 128], strides = [1, 1]} : vector<1x384xf32> to vector<1x128xf32>
    %232 = arith.mulf %228, %231 : vector<1x128xf32>
    %233 = arith.addf %230, %232 : vector<1x128xf32>
    %234 = math.tanh %233 : vector<1x128xf32>
    %cst_58 = arith.constant 1.000000e+00 : f32
    %235 = vector.broadcast %cst_58 : f32 to vector<1x128xf32>
    %236 = arith.subf %235, %229 : vector<1x128xf32>
    %237 = arith.mulf %236, %234 : vector<1x128xf32>
    %238 = arith.mulf %229, %205 : vector<1x128xf32>
    %239 = arith.addf %237, %238 : vector<1x128xf32>
    %240 = arith.index_cast %c6_i32 : i32 to index
    %c0_59 = arith.constant 0 : index
    %c0_60 = arith.constant 0 : index
    %241 = vector.load %arg6[%240, %c0_59, %c0_60] : memref<8x1x128xf32, #tpu.memory_space<vmem>>, vector<1x1x128xf32>
    %242 = vector.shape_cast %241 : vector<1x1x128xf32> to vector<1x128xf32>
    %243 = vector.shape_cast %239 : vector<1x128xf32> to vector<1x1x128xf32>
    tpu.vector_store %arg6[%240, %c0_59, %c0_60], %243 {strides = array<i32>} : memref<8x1x128xf32, #tpu.memory_space<vmem>>, vector<1x1x128xf32>,
    %244 = arith.truncf %239 : vector<1x128xf32> to vector<1x128xbf16>
    %c7_i32 = arith.constant 7 : i32
    %c8_i32_61 = arith.constant 8 : i32
    %245 = arith.muli %arg0, %c8_i32_61 : i32
    %246 = arith.addi %245, %c7_i32 : i32
    %247 = arith.index_cast %246 : i32 to index
    %248 = memref.load %arg1[%247] : memref<8xi32, #tpu.memory_space<smem>>
    %249 = arith.index_cast %248 : i32 to index
    %c0_62 = arith.constant 0 : index
    %c0_63 = arith.constant 0 : index
    %250 = vector.load %arg2[%249, %c0_62, %c0_63] : memref<50x1x384xf32, #tpu.memory_space<vmem>>, vector<1x1x384xf32>
    %251 = vector.shape_cast %250 : vector<1x1x384xf32> to vector<1x384xf32>
    %cst_64 = arith.constant dense<0.000000e+00> : vector<1x384xf32>
    %252 = tpu.matmul %244, %3, %cst_64 {dimension_numbers = #tpu.dot_dimension_numbers<[1], [0], [0], [1], [0, 0, 1, 1], [], []>} : vector<1x128xbf16>, vector<128x384xbf16>, vector<1x384xf32> -> vector<1x384xf32>
    %253 = arith.addf %252, %4 : vector<1x384xf32>
    %254 = vector.extract_strided_slice %251 {offsets = [0, 0], sizes = [1, 256], strides = [1, 1]} : vector<1x384xf32> to vector<1x256xf32>
    %255 = vector.extract_strided_slice %253 {offsets = [0, 0], sizes = [1, 256], strides = [1, 1]} : vector<1x384xf32> to vector<1x256xf32>
    %256 = arith.addf %254, %255 : vector<1x256xf32>
    %257 = arith.negf %256 : vector<1x256xf32>
    %258 = math.exp %257 : vector<1x256xf32>
    %cst_65 = arith.constant 1.000000e+00 : f32
    %259 = vector.broadcast %cst_65 : f32 to vector<1x256xf32>
    %260 = arith.addf %259, %258 : vector<1x256xf32>
    %261 = arith.divf %259, %260 : vector<1x256xf32>
    %262 = vector.extract_strided_slice %261 {offsets = [0, 0], sizes = [1, 128], strides = [1, 1]} : vector<1x256xf32> to vector<1x128xf32>
    %263 = vector.extract_strided_slice %261 {offsets = [0, 128], sizes = [1, 128], strides = [1, 1]} : vector<1x256xf32> to vector<1x128xf32>
    %264 = vector.extract_strided_slice %251 {offsets = [0, 256], sizes = [1, 128], strides = [1, 1]} : vector<1x384xf32> to vector<1x128xf32>
    %265 = vector.extract_strided_slice %253 {offsets = [0, 256], sizes = [1, 128], strides = [1, 1]} : vector<1x384xf32> to vector<1x128xf32>
    %266 = arith.mulf %262, %265 : vector<1x128xf32>
    %267 = arith.addf %264, %266 : vector<1x128xf32>
    %268 = math.tanh %267 : vector<1x128xf32>
    %cst_66 = arith.constant 1.000000e+00 : f32
    %269 = vector.broadcast %cst_66 : f32 to vector<1x128xf32>
    %270 = arith.subf %269, %263 : vector<1x128xf32>
    %271 = arith.mulf %270, %268 : vector<1x128xf32>
    %272 = arith.mulf %263, %239 : vector<1x128xf32>
    %273 = arith.addf %271, %272 : vector<1x128xf32>
    %274 = arith.index_cast %c7_i32 : i32 to index
    %c0_67 = arith.constant 0 : index
    %c0_68 = arith.constant 0 : index
    %275 = vector.load %arg6[%274, %c0_67, %c0_68] : memref<8x1x128xf32, #tpu.memory_space<vmem>>, vector<1x1x128xf32>
    %276 = vector.shape_cast %275 : vector<1x1x128xf32> to vector<1x128xf32>
    %277 = vector.shape_cast %273 : vector<1x128xf32> to vector<1x1x128xf32>
    tpu.vector_store %arg6[%274, %c0_67, %c0_68], %277 {strides = array<i32>} : memref<8x1x128xf32, #tpu.memory_space<vmem>>, vector<1x1x128xf32>,
    %278 = arith.truncf %273 : vector<1x128xf32> to vector<1x128xbf16>
    %c8_i32_69 = arith.constant 8 : i32
    %c0_70 = arith.constant 0 : index
    %c0_71 = arith.constant 0 : index
    %279 = vector.load %arg7[%c0_70, %c0_71] : memref<1x128xf32, #tpu.memory_space<vmem>>, vector<1x128xf32>
    tpu.vector_store %arg7[%c0_70, %c0_71], %273 {strides = array<i32>} : memref<1x128xf32, #tpu.memory_space<vmem>>, vector<1x128xf32>,
    return
  }
  func.func @transform_0(%arg0: i32, %arg1: memref<8xi32, #tpu.memory_space<smem>>) -> (i32, i32, i32) {
    %c0_i32 = arith.constant 0 : i32
    %c0_i32_0 = arith.constant 0 : i32
    %c0_i32_1 = arith.constant 0 : i32
    %c0_i32_2 = arith.constant 0 : i32
    return %c0_i32, %c0_i32_0, %c0_i32_1 : i32, i32, i32
  }
  func.func @transform_1(%arg0: i32, %arg1: memref<8xi32, #tpu.memory_space<smem>>) -> (i32, i32) {
    %c0_i32 = arith.constant 0 : i32
    %c0_i32_0 = arith.constant 0 : i32
    %c0_i32_1 = arith.constant 0 : i32
    return %c0_i32, %c0_i32_0 : i32, i32
  }
  func.func @transform_2(%arg0: i32, %arg1: memref<8xi32, #tpu.memory_space<smem>>) -> (i32, i32) {
    %c0_i32 = arith.constant 0 : i32
    %c0_i32_0 = arith.constant 0 : i32
    %c0_i32_1 = arith.constant 0 : i32
    return %c0_i32, %c0_i32_0 : i32, i32
  }
  func.func @transform_3(%arg0: i32, %arg1: memref<8xi32, #tpu.memory_space<smem>>) -> (i32, i32) {
    %c0_i32 = arith.constant 0 : i32
    %c0_i32_0 = arith.constant 0 : i32
    %c0_i32_1 = arith.constant 0 : i32
    return %c0_i32, %c0_i32_0 : i32, i32
  }
  func.func @transform_4(%arg0: i32, %arg1: memref<8xi32, #tpu.memory_space<smem>>) -> (i32, i32, i32) {
    %c0_i32 = arith.constant 0 : i32
    %c0_i32_0 = arith.constant 0 : i32
    %c0_i32_1 = arith.constant 0 : i32
    return %arg0, %c0_i32, %c0_i32_0 : i32, i32, i32
  }
}

</mosaic_0001>

<bundles_post_ra>
// kernel: tpu_custom_call.1
= control target key start
LH: loop header
LB: loop body
LE: loop exit
PB: predicated region body
PF: predicated region fallthrough
CT: control target
= control target key end

     0   :  { %s1274_s21 = smov [#allocation4]   ;;  %s1640_s0 = inlined_call_operand.hbm [shape: s32[8], index: 0, kind: input, shape index: {}]   ;;  %s1641_s1 = inlined_call_operand.hbm [shape: f32[50,1,384], index: 1, kind: input, shape index: {}]   ;;  %s1642_s2 = inlined_call_operand.hbm [shape: bf16[128,384], index: 2, kind: input, shape index: {}]   ;;  %s1643_s3 = inlined_call_operand.hbm [shape: f32[1,384], index: 3, kind: input, shape index: {}]   ;;  %s1644_s4 = inlined_call_operand.vmem [shape: f32[1,128], index: 4, kind: input, shape index: {}]   ;;  %s1645_s5 = inlined_call_operand.hbm [shape: f32[8,1,128], index: 5, kind: output, shape index: {}]  }
   0x1   :  { %s11_s20 = sshll.u32 %s1640_s0, 4  ;;  %s12_s20 = int_to_ptr.hbm [resolvable:$true] %s11_s20 }
   0x2   :  { %14 = dma.hbm_to_smem %s12_s20, 16, %s1274_s21, [#allocation3] }
   0x3   :  { %1266 = dma.done.wait [#allocation3], 16 }
   0x4   :  { %1267 = vsyncadd [#allocation3], 4294967280 }
   0x5   :  { %17 = sfence }
   0x6   :  { %18 = vsyncpa [#allocation6], 0 }
   0x7   :  { %19 = vsyncpa [#allocation9], 0  ;;  %s38_s24 = sshll.u32 %s1642_s2, 4  ;;  %s39_s24 = int_to_ptr.hbm [resolvable:$true] %s38_s24 }
   0x8   :  { %20 = vsyncpa [#allocation7], 0  ;;  %s1275_s25 = smov [#allocation8]   ;;  %s25_s0 = sshll.u32 %s1641_s1, 4  ;;  %s26_s0 = int_to_ptr.hbm [resolvable:$true] %s25_s0 }
   0x9   :  { %s40_s26 = sshll.u32 %s1275_s25, 4  ;;  %s1276_s29 = smov 192   ;;  %s41_s26 = int_to_ptr.vmem [resolvable:$true] %s40_s26 }
   0xa   :  { %s1277_s30 = smov 12   ;;  %s1278_s6 = smov [#allocation5]  }
   0xb   :  { %46 = dma.hbm_to_vmem [thread:$0]  %s39_s24, 3072, %s41_s26, [#allocation9], %s1276_s29, %s1276_s29, %s1277_s30  }
   0xc   :  { %s27_s7 = sshll.u32 %s1278_s6, 4  ;;  %s1279_s8 = smov 48   ;;  %s28_s7 = int_to_ptr.vmem [resolvable:$true] %s27_s7 }
   0xd   :  { %s1280_s9 = smov 3   ;;  %s52_s11 = sshll.u32 %s1643_s3, 4  ;;  %s53_s11 = int_to_ptr.hbm [resolvable:$true] %s52_s11 }
   0xe   :  { %33 = dma.hbm_to_vmem [thread:$0]  %s26_s0, 2400, %s28_s7, [#allocation6], %s1279_s8, %s1279_s8, %s1280_s9  }
   0xf   :  { %s1281_s12 = smov [#allocation10]  }
  0x10   :  { %s54_s13 = sshll.u32 %s1281_s12, 4  ;;  %s55_s13 = int_to_ptr.vmem [resolvable:$true] %s54_s13 }
  0x11   :  { %57 = dma.hbm_to_vmem [thread:$0]  %s53_s11, 48, %s55_s13, [#allocation9]  }
  0x12   :  { %1268 = dma.done.wait [#allocation6], 2400  }
  0x13   :  { %1269 = vsyncadd [#allocation6], 4294964896 }
  0x14   :  { %1270 = dma.done.wait [#allocation9], 3120  }
  0x15   :  { %1271 = vsyncadd [#allocation9], 4294964176  ;;  %v1050_v0 = vld [vmem:[#allocation8 + $0xa8] sm:$0xf]  ;;  %v1097_v1 = vld [vmem:[#allocation8 + $0xb0] sm:$0xf0] }
  0x16   :  { %v1096_v2 = vld [vmem:[#allocation8 + $0xac] sm:$0xf]  ;;  %v1327_v3 = vor.u32 %v1097_v1, %v1050_v0  ;;  %v1052_v4 = vld [vmem:[#allocation8 + $0xb4] sm:$0xf0]  ;;  %v1038_v5 = vld [vmem:[#allocation8 + $0x90] sm:$0xf] }
  0x17   :  { %v1094_v6 = vld [vmem:[#allocation8 + $0x98] sm:$0xf0]  ;;  %v1329_v7 = vor.u32 %v1096_v2, %v1052_v4  ;;  %v1093_v8 = vld [vmem:[#allocation8 + $0x94] sm:$0xf]  ;;  %v1040_v9 = vld [vmem:[#allocation8 + $0x9c] sm:$0xf0] }
  0x18   :  { %253 = vmatpush.bf16.msra.mxu0 %v1327_v3  ;;  %v1332_v10 = vor.u32 %v1094_v6, %v1038_v5  ;;  %338 = vmatpush.bf16.msra.mxu3 %v1327_v3  ;;  %v1336_v11 = vor.u32 %v1093_v8, %v1040_v9  ;;  %v1026_v12 = vld [vmem:[#allocation8 + $0x78] sm:$0xf]  ;;  %v1091_v13 = vld [vmem:[#allocation8 + $0x80] sm:$0xf0]  ;;  %v1090_v14 = vld [vmem:[#allocation8 + $0x7c] sm:$0xf] }
  0x19   :  { %266 = vmatpush.bf16.msra.mxu1 %v1329_v7  ;;  %v1028_v15 = vld [vmem:[#allocation8 + $0x84] sm:$0xf0]  ;;  %v1058_v16 = vld [vmem:[#allocation8 + $0xb0] sm:$0xf]  ;;  %v1339_v17 = vor.u32 %v1091_v13, %v1026_v12  ;;  %v1098_v18 = vld [vmem:[#allocation8 + $0xb8] sm:$0xf0] }
  0x1a   :  { %v1343_v19 = vor.u32 %v1090_v14, %v1028_v15  ;;  %v1014_v20 = vld [vmem:[#allocation8 + $0x60] sm:$0xf]  ;;  %v1088_v21 = vld [vmem:[#allocation8 + $0x68] sm:$0xf0]  ;;  %v1345_v22 = vor.u32 %v1098_v18, %v1058_v16  ;;  %v1046_v23 = vld [vmem:[#allocation8 + $0x98] sm:$0xf] }
  0x1b   :  { %v1087_v24 = vld [vmem:[#allocation8 + $0x64] sm:$0xf]  ;;  %v1016_v25 = vld [vmem:[#allocation8 + $0x6c] sm:$0xf0]  ;;  %v1351_v28 = vor.u32 %v1088_v21, %v1014_v20  ;;  %v1034_v29 = vld [vmem:[#allocation8 + $0x80] sm:$0xf] }
  0x1c   :  { %254 = vmatpush.bf16.msra.mxu0 %v1332_v10  ;;  %339 = vmatpush.bf16.msra.mxu3 %v1332_v10  ;;  %v1095_v26 = vld [vmem:[#allocation8 + $0xa0] sm:$0xf0]  ;;  %v1092_v30 = vld [vmem:[#allocation8 + $0x88] sm:$0xf0]  ;;  %v1355_v31 = vor.u32 %v1087_v24, %v1016_v25  ;;  %v1002_v32 = vld [vmem:[#allocation8 + $0x48] sm:$0xf] }
  0x1d   :  { %267 = vmatpush.bf16.msra.mxu1 %v1336_v11  ;;  %279 = vmatpush.bf16.msra.mxu2 %v1345_v22  ;;  %v1348_v27 = vor.u32 %v1095_v26, %v1046_v23  ;;  %v1085_v33 = vld [vmem:[#allocation8 + $0x50] sm:$0xf0]  ;;  %v76_v34 = vld [vmem:[%s1644_s4] sm:$0x1]  ;;  %v1084_v35 = vld [vmem:[#allocation8 + $0x4c] sm:$0xf]  ;;  %v1361_v37 = vor.u32 %v1092_v30, %v1034_v29 }
  0x1e   :  { %v1004_v36 = vld [vmem:[#allocation8 + $0x54] sm:$0xf0]  ;;  %77 = vst [vmem:[#allocation2] sm:$0x1] %v76_v34  ;;  %v1364_v38 = vor.u32 %v1085_v33, %v1002_v32  ;;  %v1022_v39 = vld [vmem:[#allocation8 + $0x68] sm:$0xf] }
  0x1f   :  { %v1089_v40 = vld [vmem:[#allocation8 + $0x70] sm:$0xf0]  ;;  %v1368_v41 = vor.u32 %v1084_v35, %v1004_v36  ;;  %v990_v42 = vld [vmem:[#allocation8 + $0x30] sm:$0xf]  ;;  %v1082_v43 = vld [vmem:[#allocation8 + $0x38] sm:$0xf0] }
  0x20   :  { %255 = vmatpush.bf16.msra.mxu0 %v1339_v17  ;;  %340 = vmatpush.bf16.msra.mxu3 %v1339_v17  ;;  %v1081_v44 = vld [vmem:[#allocation8 + $0x34] sm:$0xf]  ;;  %v992_v45 = vld [vmem:[#allocation8 + $0x3c] sm:$0xf0]  ;;  %v1371_v46 = vor.u32 %v1089_v40, %v1022_v39  ;;  %v1374_v47 = vor.u32 %v1082_v43, %v990_v42  ;;  %v1010_v48 = vld [vmem:[#allocation8 + $0x50] sm:$0xf] }
  0x21   :  { %268 = vmatpush.bf16.msra.mxu1 %v1343_v19  ;;  %280 = vmatpush.bf16.msra.mxu2 %v1348_v27  ;;  %v1086_v49 = vld [vmem:[#allocation8 + $0x58] sm:$0xf0]  ;;  %v1378_v50 = vor.u32 %v1081_v44, %v992_v45  ;;  %v978_v51 = vld [vmem:[#allocation8 + $0x18] sm:$0xf]  ;;  %v1079_v52 = vld [vmem:[#allocation8 + $0x20] sm:$0xf0] }
  0x22   :  { %v1078_v53 = vld [vmem:[#allocation8 + $0x1c] sm:$0xf]  ;;  %v980_v54 = vld [vmem:[#allocation8 + $0x24] sm:$0xf0]  ;;  %v1381_v55 = vor.u32 %v1086_v49, %v1010_v48  ;;  %v1384_v56 = vor.u32 %v1079_v52, %v978_v51  ;;  %v998_v57 = vld [vmem:[#allocation8 + $0x38] sm:$0xf] }
  0x23   :  { %v1083_v58 = vld [vmem:[#allocation8 + $0x40] sm:$0xf0]  ;;  %v1388_v59 = vor.u32 %v1078_v53, %v980_v54  ;;  %v966_v60 = vld [vmem:[#allocation8] sm:$0xf]  ;;  %v1076_v61 = vld [vmem:[#allocation8 + $0x8] sm:$0xf0] }
  0x24   :  { %256 = vmatpush.bf16.msra.mxu0 %v1351_v28  ;;  %341 = vmatpush.bf16.msra.mxu3 %v1351_v28  ;;  %v1075_v62 = vld [vmem:[#allocation8 + $0x4] sm:$0xf]  ;;  %v968_v63 = vld [vmem:[#allocation8 + $0xc] sm:$0xf0]  ;;  %v1391_v0 = vor.u32 %v1083_v58, %v998_v57  ;;  %v1394_v1 = vor.u32 %v1076_v61, %v966_v60  ;;  %v986_v4 = vld [vmem:[#allocation8 + $0x20] sm:$0xf] }
  0x25   :  { %269 = vmatpush.bf16.msra.mxu1 %v1355_v31  ;;  %281 = vmatpush.bf16.msra.mxu2 %v1361_v37  ;;  %v1396_v2 = vld [vmem:[#allocation2] sm:$0x1]  ;;  %v1080_v5 = vld [vmem:[#allocation8 + $0x28] sm:$0xf0]  ;;  %v1400_v6 = vor.u32 %v1075_v62, %v968_v63  ;;  %v1077_v13 = vld [vmem:[#allocation8 + $0x10] sm:$0xf0] }
  0x26   :  { %v112_v8 = vpack.c.bf16 %v1396_v2, %v1396_v2  ;;  %v1405_v9 = vor.u32 %v1080_v5, %v986_v4  ;;  %v974_v12 = vld [vmem:[#allocation8 + $0x8] sm:$0xf]  ;;  %s114_s4 = sld [smem:[#allocation4]]  ;;  %v110_v15 = vld [vmem:[#allocation10] sm:$0x7]  ;;  %vm295_vm0 = vcmask 1040384  }
  0x27   :  { %v1414_v14 = vor.u32 %v1077_v13, %v974_v12  ;;  %v1470_v16 = vperm.slane %v110_v15, 0  ;;  %v1472_v18 = vperm.slane %v110_v15, 1  ;;  %v1477_v44 = vperm.slane %v110_v15, 2  ;;  %s1061_s16 = sld [smem:[#allocation4 + $0x1]]  ;;  %s1282_s10 = smov [#allocation11]  }
  0x28   :  { %257 = vmatpush.bf16.msra.mxu0 %v1364_v38  ;;  %342 = vmatpush.bf16.msra.mxu3 %v1364_v38  ;;  %s1063_s19 = sld [smem:[#allocation4 + $0x2]]  ;;  %s932_s11 = sshll.u32 %s1282_s10, 4  ;;  %s933_s11 = int_to_ptr.vmem [resolvable:$true] %s932_s11 }
  0x29   :  { %270 = vmatpush.bf16.msra.mxu1 %v1368_v41  ;;  %282 = vmatpush.bf16.msra.mxu2 %v1371_v46  ;;  %s1065_s22 = sld [smem:[#allocation4 + $0x3]]  ;;  %s934_s1 = sshll.u32 %s1645_s5, 4  ;;  %s935_s1 = int_to_ptr.hbm [resolvable:$true] %s934_s1 }
  0x2a   :  { %s1067_s25 = sld [smem:[#allocation4 + $0x4]]  ;;  %s1283_s3 = smov 16  }
  0x2b   :  { %s1069_s28 = sld [smem:[#allocation4 + $0x5]] }
  0x2c   :  { %258 = vmatpush.bf16.msra.mxu0 %v1374_v47  ;;  %343 = vmatpush.bf16.msra.mxu3 %v1374_v47  ;;  %s115_s14 = smul.u32 3, %s114_s4  ;;  %s1071_s30 = sld [smem:[#allocation4 + $0x6]] }
  0x2d   :  { %271 = vmatpush.bf16.msra.mxu1 %v1378_v50  ;;  %283 = vmatpush.bf16.msra.mxu2 %v1381_v55  ;;  %s335_s17 = smul.u32 3, %s1061_s16  ;;  %s1073_s8 = sld [smem:[#allocation4 + $0x7]] }
  0x2e   :  { %s116_s15 = scalar_lea.vmem [#allocation5], %s115_s14  ;;  %s420_s20 = smul.u32 3, %s1063_s19 }
  0x2f   :  { %v117_v25 = vld [vmem:[%s116_s15] sm:$0x7]  ;;  %s336_s18 = scalar_lea.vmem [#allocation5], %s335_s17  ;;  %s505_s23 = smul.u32 3, %s1065_s22 }
  0x30   :  { %259 = vmatpush.bf16.msra.mxu0 %v1384_v56  ;;  %344 = vmatpush.bf16.msra.mxu3 %v1384_v56  ;;  %v320_v58 = vrot.slane %v117_v25, 2  ;;  %s421_s21 = scalar_lea.vmem [#allocation5], %s420_s20  ;;  %s590_s26 = smul.u32 3, %s1067_s25 }
  0x31   :  { %272 = vmatpush.bf16.msra.mxu1 %v1388_v59  ;;  %284 = vmatpush.bf16.msra.mxu2 %v1391_v0  ;;  %s506_s24 = scalar_lea.vmem [#allocation5], %s505_s23  ;;  %s675_s0 = smul.u32 3, %s1069_s28 }
  0x32   :  { %s591_s27 = scalar_lea.vmem [#allocation5], %s590_s26  ;;  %s760_s6 = smul.u32 3, %s1071_s30 }
  0x33   :  { %s676_s29 = scalar_lea.vmem [#allocation5], %s675_s0  ;;  %s845_s9 = smul.u32 3, %s1073_s8 }
  0x34   :  { %260 = vmatpush.bf16.msra.mxu0 %v1394_v1  ;;  %345 = vmatpush.bf16.msra.mxu3 %v1394_v1  ;;  %s761_s7 = scalar_lea.vmem [#allocation5], %s760_s6  ;;  %s1284_s4 = smov 1  }
  0x35   :  { %273 = vmatpush.bf16.msra.mxu1 %v1400_v6  ;;  %285 = vmatpush.bf16.msra.mxu2 %v1405_v9  ;;  %s846_s2 = scalar_lea.vmem [#allocation5], %s845_s9 }
  0x37   :  { %261 = vmatmul.bf16.vlgmr.msra.gmra.mxu0 %v112_v8 }
  0x38   :  { %351 = vmatpush.bf16.msrb.mxu0 %v1329_v7  ;;  %436 = vmatpush.bf16.msrb.mxu3 %v1329_v7 }
  0x39   :  { %364 = vmatpush.bf16.msrb.mxu1 %v1345_v22  ;;  %286 = vmatpush.bf16.msra.mxu2 %v1414_v14 }
  0x3a   :  { %274 = vmatmul.bf16.vlgmr.msra.gmra.mxu1 %v112_v8 }
  0x3c   :  { %352 = vmatpush.bf16.msrb.mxu0 %v1336_v11  ;;  %437 = vmatpush.bf16.msrb.mxu3 %v1336_v11 }
  0x3d   :  { %365 = vmatpush.bf16.msrb.mxu1 %v1348_v27  ;;  %423 = vmatpush.bf16.msrb.mxu2 %v1327_v3 }
  0x3e   :  { %287 = vmatmul.bf16.vlgmr.msra.gmra.mxu2 %v112_v8 }
  0x40   :  { %353 = vmatpush.bf16.msrb.mxu0 %v1343_v19  ;;  %438 = vmatpush.bf16.msrb.mxu3 %v1343_v19 }
  0x41   :  { %366 = vmatpush.bf16.msrb.mxu1 %v1361_v37  ;;  %424 = vmatpush.bf16.msrb.mxu2 %v1332_v10 }
  0x44   :  { %354 = vmatpush.bf16.msrb.mxu0 %v1355_v31  ;;  %439 = vmatpush.bf16.msrb.mxu3 %v1355_v31 }
  0x45   :  { %367 = vmatpush.bf16.msrb.mxu1 %v1371_v46  ;;  %425 = vmatpush.bf16.msrb.mxu2 %v1339_v17 }
  0x48   :  { %355 = vmatpush.bf16.msrb.mxu0 %v1368_v41  ;;  %440 = vmatpush.bf16.msrb.mxu3 %v1368_v41 }
  0x49   :  { %368 = vmatpush.bf16.msrb.mxu1 %v1381_v55  ;;  %426 = vmatpush.bf16.msrb.mxu2 %v1351_v28 }
  0x4c   :  { %356 = vmatpush.bf16.msrb.mxu0 %v1378_v50  ;;  %441 = vmatpush.bf16.msrb.mxu3 %v1378_v50 }
  0x4d   :  { %369 = vmatpush.bf16.msrb.mxu1 %v1391_v0  ;;  %427 = vmatpush.bf16.msrb.mxu2 %v1364_v38 }
  0x50   :  { %357 = vmatpush.bf16.msrb.mxu0 %v1388_v59  ;;  %442 = vmatpush.bf16.msrb.mxu3 %v1388_v59 }
  0x51   :  { %370 = vmatpush.bf16.msrb.mxu1 %v1405_v9  ;;  %428 = vmatpush.bf16.msrb.mxu2 %v1374_v47 }
  0x54   :  { %358 = vmatpush.bf16.msrb.mxu0 %v1400_v6  ;;  %443 = vmatpush.bf16.msrb.mxu3 %v1400_v6 }
  0x55   :  { %371 = vmatpush.bf16.msrb.mxu1 %v1414_v14  ;;  %429 = vmatpush.bf16.msrb.mxu2 %v1384_v56 }
  0x58   :  { %449 = vmatpush.bf16.msra.mxu0 %v1345_v22 }
  0x59   :  { %508 = vmatpush.bf16.msra.mxu1 %v1327_v3  ;;  %430 = vmatpush.bf16.msrb.mxu2 %v1394_v1 }
  0x5c   :  { %450 = vmatpush.bf16.msra.mxu0 %v1348_v27 }
  0x5d   :  { %509 = vmatpush.bf16.msra.mxu1 %v1332_v10  ;;  %521 = vmatpush.bf16.msra.mxu2 %v1329_v7 }
  0x60   :  { %451 = vmatpush.bf16.msra.mxu0 %v1361_v37 }
  0x61   :  { %510 = vmatpush.bf16.msra.mxu1 %v1339_v17  ;;  %522 = vmatpush.bf16.msra.mxu2 %v1336_v11 }
  0x64   :  { %452 = vmatpush.bf16.msra.mxu0 %v1371_v46 }
  0x65   :  { %511 = vmatpush.bf16.msra.mxu1 %v1351_v28  ;;  %523 = vmatpush.bf16.msra.mxu2 %v1343_v19 }
  0x68   :  { %453 = vmatpush.bf16.msra.mxu0 %v1381_v55 }
  0x69   :  { %512 = vmatpush.bf16.msra.mxu1 %v1364_v38  ;;  %524 = vmatpush.bf16.msra.mxu2 %v1355_v31 }
  0x6c   :  { %454 = vmatpush.bf16.msra.mxu0 %v1391_v0 }
  0x6d   :  { %513 = vmatpush.bf16.msra.mxu1 %v1374_v47  ;;  %525 = vmatpush.bf16.msra.mxu2 %v1368_v41 }
  0x70   :  { %455 = vmatpush.bf16.msra.mxu0 %v1405_v9 }
  0x71   :  { %514 = vmatpush.bf16.msra.mxu1 %v1384_v56  ;;  %526 = vmatpush.bf16.msra.mxu2 %v1378_v50 }
  0x74   :  { %456 = vmatpush.bf16.msra.mxu0 %v1414_v14 }
  0x75   :  { %515 = vmatpush.bf16.msra.mxu1 %v1394_v1  ;;  %527 = vmatpush.bf16.msra.mxu2 %v1388_v59 }
  0x79   :  { %528 = vmatpush.bf16.msra.mxu2 %v1400_v6 }
  0xb4   :  { %v262_v20 = vpop.f32.mrf.mxu0 }
  0xb5   :  { %v263_v23 = vadd.f32 %v262_v20, %v1470_v16 }
  0xb7   :  { %v275_v21 = vpop.f32.mrf.mxu1 }
  0xb8   :  { %v276_v24 = vadd.f32 %v275_v21, %v1472_v18 }
  0xba   :  { %v294_v26 = vrot.slane %v276_v24, 7 }
  0xbc   :  { %v296_v29 = vsel %vm295_vm0, %v263_v23, %v294_v26  ;;  %v264_v32 = vpop.f32.mrf.mxu0 }
  0xbd   :  { %v298_v30 = vadd.f32 %v296_v29, %v117_v25  ;;  %v337_v25 = vld [vmem:[%s336_s18] sm:$0x7] }
  0xbf   :  { %v1060_v33 = vmul.f32 -1.442695, %v298_v30  ;;  %v277_v34 = vpop.f32.mrf.mxu1 }
  0xc1   :  { %1110 = vpow2.f32 %v1060_v33  ;;  %v288_v35 = vpop.f32.mrf.mxu2 }
  0xc2   :  { %v289_v52 = vadd.f32 %v288_v35, %v1477_v44 }
  0xc7   :  { %v1111_v36 = vpop.eup %1110 }
  0xc8   :  { %v302_v39 = vadd.f32 1.0, %v1111_v36 }
  0xc9   :  { %v290_v40 = vpop.f32.mrf.mxu2 }
  0xca   :  { %1112 = vrcp.f32 %v302_v39  ;;  %v314_v48 = vand.u32 2147483648, %v302_v39  ;;  %v312_v51 = vand.u32 2147483647, %v302_v39  ;;  %vm308_vm2 = vweird.f32 %v302_v39 }
  0xcc   :  { %v315_v54 = vor.u32 1.1754944e-38, %v314_v48  ;;  %vm313_vm4 = vcmp.eq.f32.partialorder %v312_v51, 8.507059e+37 }
  0xd0   :  { %v1113_v42 = vpop.eup %1112 }
  0xd1   :  { %v304_v43 = vmul.f32 %v1113_v42, %v302_v39  ;;  %vm309_vm1 = vweird.f32 %v1113_v42 }
  0xd2   :  { %vm310_vm3 = vmor %vm308_vm2, %vm309_vm1 }
  0xd3   :  { %v305_v45 = vsub.f32 1.0, %v304_v43 }
  0xd5   :  { %v306_v49 = vmul.f32 %v1113_v42, %v305_v45 }
  0xd7   :  { %v307_v53 = vadd.f32 %v1113_v42, %v306_v49 }
  0xd9   :  { %v311_v57 = vsel %vm310_vm3, %v1113_v42, %v307_v53 }
  0xda   :  { %v316_v60 = vsel %vm313_vm4, %v315_v54, %v311_v57  ;;  %v404_v57 = vrot.slane %v337_v25, 2 }
  0xdb   :  { %v318_v61 = vmul.f32 %v316_v60, %v289_v52  ;;  %v325_v63 = vrot.slane %v316_v60, 1 }
  0xdd   :  { %v322_v62 = vadd.f32 %v320_v58, %v318_v61  ;;  %v327_v4 = vsub.f32 1.0, %v325_v63  ;;  %v329_v12 = vmul.f32 %v325_v63, %v1396_v2 }
  0xdf   :  { %1114 = vtanh.f32 %v322_v62 }
  0xe5   :  { %v1115_v5 = vpop.eup %1114 }
  0xe6   :  { %v328_v8 = vmul.f32 %v1115_v5, %v327_v4 }
  0xe8   :  { %v1481_v13 = vadd.f32 %v329_v12, %v328_v8 }
  0xea   :  { %331 = vst [vmem:[#allocation11] sm:$0x1] %v1481_v13  ;;  %v332_v15 = vpack.c.bf16 %v1481_v13, %v1481_v13 }
  0xec   :  { %346 = vmatmul.bf16.vlgmr.msra.gmra.mxu3 %v332_v15  ;;  %359 = vmatmul.bf16.vlgmr.msrb.gmra.mxu0 %v332_v15 }
  0xed   :  { %372 = vmatmul.bf16.vlgmr.msrb.gmra.mxu1 %v332_v15  ;;  %534 = vmatpush.bf16.msra.mxu3 %v1345_v22 }
  0xee   :  { %593 = vmatpush.bf16.msrb.mxu0 %v1327_v3  ;;  %606 = vmatpush.bf16.msrb.mxu1 %v1329_v7 }
  0xf1   :  { %535 = vmatpush.bf16.msra.mxu3 %v1348_v27 }
  0xf2   :  { %594 = vmatpush.bf16.msrb.mxu0 %v1332_v10  ;;  %607 = vmatpush.bf16.msrb.mxu1 %v1336_v11 }
  0xf5   :  { %536 = vmatpush.bf16.msra.mxu3 %v1361_v37 }
  0xf6   :  { %595 = vmatpush.bf16.msrb.mxu0 %v1339_v17  ;;  %608 = vmatpush.bf16.msrb.mxu1 %v1343_v19 }
  0xf9   :  { %537 = vmatpush.bf16.msra.mxu3 %v1371_v46 }
  0xfa   :  { %596 = vmatpush.bf16.msrb.mxu0 %v1351_v28  ;;  %609 = vmatpush.bf16.msrb.mxu1 %v1355_v31 }
  0xfd   :  { %538 = vmatpush.bf16.msra.mxu3 %v1381_v55 }
  0xfe   :  { %597 = vmatpush.bf16.msrb.mxu0 %v1364_v38  ;;  %610 = vmatpush.bf16.msrb.mxu1 %v1368_v41 }
 0x101   :  { %539 = vmatpush.bf16.msra.mxu3 %v1391_v0 }
 0x102   :  { %598 = vmatpush.bf16.msrb.mxu0 %v1374_v47  ;;  %611 = vmatpush.bf16.msrb.mxu1 %v1378_v50 }
 0x105   :  { %540 = vmatpush.bf16.msra.mxu3 %v1405_v9 }
 0x106   :  { %599 = vmatpush.bf16.msrb.mxu0 %v1384_v56  ;;  %612 = vmatpush.bf16.msrb.mxu1 %v1388_v59 }
 0x109   :  { %541 = vmatpush.bf16.msra.mxu3 %v1414_v14 }
 0x10a   :  { %600 = vmatpush.bf16.msrb.mxu0 %v1394_v1  ;;  %613 = vmatpush.bf16.msrb.mxu1 %v1400_v6 }
 0x169   :  { %v360_v2 = vpop.f32.mrf.mxu0 }
 0x16a   :  { %v373_v20 = vpop.f32.mrf.mxu1  ;;  %v361_v21 = vadd.f32 %v360_v2, %v1472_v18 }
 0x16b   :  { %v374_v53 = vadd.f32 %v373_v20, %v1477_v44 }
 0x16c   :  { %v379_v24 = vrot.slane %v361_v21, 7 }
 0x16f   :  { %v347_v23 = vpop.f32.mrf.mxu3 }
 0x170   :  { %v348_v26 = vadd.f32 %v347_v23, %v1470_v16 }
 0x171   :  { %v362_v29 = vpop.f32.mrf.mxu0 }
 0x172   :  { %v380_v30 = vsel %vm295_vm0, %v348_v26, %v379_v24  ;;  %v375_v32 = vpop.f32.mrf.mxu1  ;;  %v422_v24 = vld [vmem:[%s421_s21] sm:$0x7] }
 0x173   :  { %v382_v33 = vadd.f32 %v380_v30, %v337_v25 }
 0x175   :  { %v1062_v34 = vmul.f32 -1.442695, %v382_v33 }
 0x177   :  { %1116 = vpow2.f32 %v1062_v34  ;;  %v349_v35 = vpop.f32.mrf.mxu3 }
 0x17d   :  { %v1117_v36 = vpop.eup %1116 }
 0x17e   :  { %v386_v39 = vadd.f32 1.0, %v1117_v36 }
 0x180   :  { %1118 = vrcp.f32 %v386_v39  ;;  %v398_v45 = vand.u32 2147483648, %v386_v39  ;;  %v396_v49 = vand.u32 2147483647, %v386_v39  ;;  %vm392_vm6 = vweird.f32 %v386_v39 }
 0x182   :  { %v399_v52 = vor.u32 1.1754944e-38, %v398_v45  ;;  %vm397_vm8 = vcmp.eq.f32.partialorder %v396_v49, 8.507059e+37 }
 0x186   :  { %v1119_v40 = vpop.eup %1118 }
 0x187   :  { %v388_v42 = vmul.f32 %v1119_v40, %v386_v39  ;;  %vm393_vm5 = vweird.f32 %v1119_v40 }
 0x188   :  { %vm394_vm7 = vmor %vm392_vm6, %vm393_vm5 }
 0x189   :  { %v389_v43 = vsub.f32 1.0, %v388_v42 }
 0x18b   :  { %v390_v48 = vmul.f32 %v1119_v40, %v389_v43 }
 0x18d   :  { %v391_v51 = vadd.f32 %v1119_v40, %v390_v48 }
 0x18f   :  { %v395_v54 = vsel %vm394_vm7, %v1119_v40, %v391_v51 }
 0x190   :  { %v400_v58 = vsel %vm397_vm8, %v399_v52, %v395_v54  ;;  %v489_v54 = vrot.slane %v422_v24, 2 }
 0x191   :  { %v402_v60 = vmul.f32 %v400_v58, %v374_v53  ;;  %v409_v62 = vrot.slane %v400_v58, 1 }
 0x193   :  { %v406_v61 = vadd.f32 %v404_v57, %v402_v60  ;;  %v411_v63 = vsub.f32 1.0, %v409_v62  ;;  %v413_v8 = vmul.f32 %v409_v62, %v1481_v13 }
 0x195   :  { %1120 = vtanh.f32 %v406_v61 }
 0x19b   :  { %v1121_v4 = vpop.eup %1120 }
 0x19c   :  { %v412_v5 = vmul.f32 %v1121_v4, %v411_v63 }
 0x19e   :  { %v1515_v12 = vadd.f32 %v413_v8, %v412_v5 }
 0x1a0   :  { %416 = vst [vmem:[#allocation11 + $0x1] sm:$0x1] %v1515_v12  ;;  %v417_v15 = vpack.c.bf16 %v1515_v12, %v1515_v12 }
 0x1a2   :  { %431 = vmatmul.bf16.vlgmr.msrb.gmra.mxu2 %v417_v15  ;;  %444 = vmatmul.bf16.vlgmr.msrb.gmra.mxu3 %v417_v15 }
 0x1a3   :  { %457 = vmatmul.bf16.vlgmr.msra.gmra.mxu0 %v417_v15  ;;  %619 = vmatpush.bf16.msrb.mxu2 %v1345_v22 }
 0x1a4   :  { %678 = vmatpush.bf16.msrb.mxu3 %v1327_v3  ;;  %691 = vmatpush.bf16.msra.mxu0 %v1329_v7 }
 0x1a7   :  { %620 = vmatpush.bf16.msrb.mxu2 %v1348_v27 }
 0x1a8   :  { %679 = vmatpush.bf16.msrb.mxu3 %v1332_v10  ;;  %692 = vmatpush.bf16.msra.mxu0 %v1336_v11 }
 0x1ab   :  { %621 = vmatpush.bf16.msrb.mxu2 %v1361_v37 }
 0x1ac   :  { %680 = vmatpush.bf16.msrb.mxu3 %v1339_v17  ;;  %693 = vmatpush.bf16.msra.mxu0 %v1343_v19 }
 0x1af   :  { %622 = vmatpush.bf16.msrb.mxu2 %v1371_v46 }
 0x1b0   :  { %681 = vmatpush.bf16.msrb.mxu3 %v1351_v28  ;;  %694 = vmatpush.bf16.msra.mxu0 %v1355_v31 }
 0x1b3   :  { %623 = vmatpush.bf16.msrb.mxu2 %v1381_v55 }
 0x1b4   :  { %682 = vmatpush.bf16.msrb.mxu3 %v1364_v38  ;;  %695 = vmatpush.bf16.msra.mxu0 %v1368_v41 }
 0x1b7   :  { %624 = vmatpush.bf16.msrb.mxu2 %v1391_v0 }
 0x1b8   :  { %683 = vmatpush.bf16.msrb.mxu3 %v1374_v47  ;;  %696 = vmatpush.bf16.msra.mxu0 %v1378_v50 }
 0x1bb   :  { %625 = vmatpush.bf16.msrb.mxu2 %v1405_v9 }
 0x1bc   :  { %684 = vmatpush.bf16.msrb.mxu3 %v1384_v56  ;;  %697 = vmatpush.bf16.msra.mxu0 %v1388_v59 }
 0x1bf   :  { %626 = vmatpush.bf16.msrb.mxu2 %v1414_v14 }
 0x1c0   :  { %685 = vmatpush.bf16.msrb.mxu3 %v1394_v1  ;;  %698 = vmatpush.bf16.msra.mxu0 %v1400_v6 }
 0x220   :  { %v458_v13 = vpop.f32.mrf.mxu0 }
 0x221   :  { %v459_v52 = vadd.f32 %v458_v13, %v1477_v44 }
 0x225   :  { %v432_v2 = vpop.f32.mrf.mxu2  ;;  %v445_v20 = vpop.f32.mrf.mxu3 }
 0x226   :  { %v446_v21 = vadd.f32 %v445_v20, %v1472_v18  ;;  %v433_v23 = vadd.f32 %v432_v2, %v1470_v16 }
 0x228   :  { %v464_v25 = vrot.slane %v446_v21, 7  ;;  %v460_v26 = vpop.f32.mrf.mxu0 }
 0x22a   :  { %v465_v29 = vsel %vm295_vm0, %v433_v23, %v464_v25 }
 0x22b   :  { %v467_v30 = vadd.f32 %v465_v29, %v422_v24  ;;  %v507_v24 = vld [vmem:[%s506_s24] sm:$0x7] }
 0x22d   :  { %v1064_v32 = vmul.f32 -1.442695, %v467_v30  ;;  %v434_v33 = vpop.f32.mrf.mxu2  ;;  %v447_v34 = vpop.f32.mrf.mxu3 }
 0x22f   :  { %1122 = vpow2.f32 %v1064_v32 }
 0x235   :  { %v1123_v35 = vpop.eup %1122 }
 0x236   :  { %v471_v36 = vadd.f32 1.0, %v1123_v35 }
 0x238   :  { %1124 = vrcp.f32 %v471_v36  ;;  %v483_v43 = vand.u32 2147483648, %v471_v36  ;;  %v481_v48 = vand.u32 2147483647, %v471_v36  ;;  %vm477_vm10 = vweird.f32 %v471_v36 }
 0x23a   :  { %v484_v51 = vor.u32 1.1754944e-38, %v483_v43  ;;  %vm482_vm12 = vcmp.eq.f32.partialorder %v481_v48, 8.507059e+37 }
 0x23e   :  { %v1125_v39 = vpop.eup %1124 }
 0x23f   :  { %v473_v40 = vmul.f32 %v1125_v39, %v471_v36  ;;  %vm478_vm9 = vweird.f32 %v1125_v39 }
 0x240   :  { %vm479_vm11 = vmor %vm477_vm10, %vm478_vm9 }
 0x241   :  { %v474_v42 = vsub.f32 1.0, %v473_v40 }
 0x243   :  { %v475_v45 = vmul.f32 %v1125_v39, %v474_v42 }
 0x245   :  { %v476_v49 = vadd.f32 %v1125_v39, %v475_v45 }
 0x247   :  { %v480_v53 = vsel %vm479_vm11, %v1125_v39, %v476_v49 }
 0x248   :  { %v485_v57 = vsel %vm482_vm12, %v484_v51, %v480_v53  ;;  %v574_v53 = vrot.slane %v507_v24, 2 }
 0x249   :  { %v487_v58 = vmul.f32 %v485_v57, %v459_v52  ;;  %v494_v61 = vrot.slane %v485_v57, 1 }
 0x24b   :  { %v491_v60 = vadd.f32 %v489_v54, %v487_v58  ;;  %v496_v62 = vsub.f32 1.0, %v494_v61  ;;  %v498_v5 = vmul.f32 %v494_v61, %v1515_v12 }
 0x24d   :  { %1126 = vtanh.f32 %v491_v60 }
 0x253   :  { %v1127_v63 = vpop.eup %1126 }
 0x254   :  { %v497_v4 = vmul.f32 %v1127_v63, %v496_v62 }
 0x256   :  { %v1549_v8 = vadd.f32 %v498_v5, %v497_v4 }
 0x258   :  { %501 = vst [vmem:[#allocation11 + $0x2] sm:$0x1] %v1549_v8  ;;  %v502_v15 = vpack.c.bf16 %v1549_v8, %v1549_v8 }
 0x25a   :  { %516 = vmatmul.bf16.vlgmr.msra.gmra.mxu1 %v502_v15  ;;  %529 = vmatmul.bf16.vlgmr.msra.gmra.mxu2 %v502_v15 }
 0x25b   :  { %542 = vmatmul.bf16.vlgmr.msra.gmra.mxu3 %v502_v15  ;;  %704 = vmatpush.bf16.msra.mxu1 %v1345_v22 }
 0x25c   :  { %763 = vmatpush.bf16.msra.mxu2 %v1327_v3  ;;  %776 = vmatpush.bf16.msra.mxu3 %v1329_v7 }
 0x25f   :  { %705 = vmatpush.bf16.msra.mxu1 %v1348_v27 }
 0x260   :  { %764 = vmatpush.bf16.msra.mxu2 %v1332_v10  ;;  %777 = vmatpush.bf16.msra.mxu3 %v1336_v11 }
 0x263   :  { %706 = vmatpush.bf16.msra.mxu1 %v1361_v37 }
 0x264   :  { %765 = vmatpush.bf16.msra.mxu2 %v1339_v17  ;;  %778 = vmatpush.bf16.msra.mxu3 %v1343_v19 }
 0x267   :  { %707 = vmatpush.bf16.msra.mxu1 %v1371_v46 }
 0x268   :  { %766 = vmatpush.bf16.msra.mxu2 %v1351_v28  ;;  %779 = vmatpush.bf16.msra.mxu3 %v1355_v31 }
 0x26b   :  { %708 = vmatpush.bf16.msra.mxu1 %v1381_v55 }
 0x26c   :  { %767 = vmatpush.bf16.msra.mxu2 %v1364_v38  ;;  %780 = vmatpush.bf16.msra.mxu3 %v1368_v41 }
 0x26f   :  { %709 = vmatpush.bf16.msra.mxu1 %v1391_v0 }
 0x270   :  { %768 = vmatpush.bf16.msra.mxu2 %v1374_v47  ;;  %781 = vmatpush.bf16.msra.mxu3 %v1378_v50 }
 0x273   :  { %710 = vmatpush.bf16.msra.mxu1 %v1405_v9 }
 0x274   :  { %769 = vmatpush.bf16.msra.mxu2 %v1384_v56  ;;  %782 = vmatpush.bf16.msra.mxu3 %v1388_v59 }
 0x277   :  { %711 = vmatpush.bf16.msra.mxu1 %v1414_v14 }
 0x278   :  { %770 = vmatpush.bf16.msra.mxu2 %v1394_v1  ;;  %783 = vmatpush.bf16.msra.mxu3 %v1400_v6 }
 0x2d7   :  { %v517_v12 = vpop.f32.mrf.mxu1 }
 0x2d8   :  { %v518_v23 = vadd.f32 %v517_v12, %v1470_v16 }
 0x2dd   :  { %v530_v13 = vpop.f32.mrf.mxu2 }
 0x2de   :  { %v531_v2 = vadd.f32 %v530_v13, %v1472_v18  ;;  %v543_v20 = vpop.f32.mrf.mxu3 }
 0x2df   :  { %v519_v21 = vpop.f32.mrf.mxu1  ;;  %v544_v51 = vadd.f32 %v543_v20, %v1477_v44 }
 0x2e0   :  { %v549_v25 = vrot.slane %v531_v2, 7 }
 0x2e2   :  { %v550_v26 = vsel %vm295_vm0, %v518_v23, %v549_v25 }
 0x2e3   :  { %v552_v29 = vadd.f32 %v550_v26, %v507_v24 }
 0x2e5   :  { %v1066_v30 = vmul.f32 -1.442695, %v552_v29  ;;  %v532_v32 = vpop.f32.mrf.mxu2 }
 0x2e6   :  { %v545_v33 = vpop.f32.mrf.mxu3 }
 0x2e7   :  { %1128 = vpow2.f32 %v1066_v30 }
 0x2ed   :  { %v1129_v34 = vpop.eup %1128 }
 0x2ee   :  { %v556_v35 = vadd.f32 1.0, %v1129_v34 }
 0x2f0   :  { %1130 = vrcp.f32 %v556_v35  ;;  %v568_v42 = vand.u32 2147483648, %v556_v35  ;;  %v566_v45 = vand.u32 2147483647, %v556_v35  ;;  %vm562_vm14 = vweird.f32 %v556_v35 }
 0x2f2   :  { %v569_v49 = vor.u32 1.1754944e-38, %v568_v42  ;;  %vm567_vm1 = vcmp.eq.f32.partialorder %v566_v45, 8.507059e+37 }
 0x2f6   :  { %v1131_v36 = vpop.eup %1130 }
 0x2f7   :  { %v558_v39 = vmul.f32 %v1131_v36, %v556_v35  ;;  %vm563_vm13 = vweird.f32 %v1131_v36 }
 0x2f8   :  { %vm564_vm15 = vmor %vm562_vm14, %vm563_vm13 }
 0x2f9   :  { %v559_v40 = vsub.f32 1.0, %v558_v39 }
 0x2fb   :  { %v560_v43 = vmul.f32 %v1131_v36, %v559_v40 }
 0x2fd   :  { %v561_v48 = vadd.f32 %v1131_v36, %v560_v43 }
 0x2ff   :  { %v565_v52 = vsel %vm564_vm15, %v1131_v36, %v561_v48 }
 0x300   :  { %v570_v54 = vsel %vm567_vm1, %v569_v49, %v565_v52 }
 0x301   :  { %v572_v57 = vmul.f32 %v570_v54, %v544_v51  ;;  %v579_v60 = vrot.slane %v570_v54, 1 }
 0x303   :  { %v576_v58 = vadd.f32 %v574_v53, %v572_v57  ;;  %v581_v61 = vsub.f32 1.0, %v579_v60  ;;  %v583_v4 = vmul.f32 %v579_v60, %v1549_v8 }
 0x305   :  { %1132 = vtanh.f32 %v576_v58 }
 0x30b   :  { %v1133_v62 = vpop.eup %1132 }
 0x30c   :  { %v582_v63 = vmul.f32 %v1133_v62, %v581_v61 }
 0x30e   :  { %v1583_v5 = vadd.f32 %v583_v4, %v582_v63 }
 0x310   :  { %586 = vst [vmem:[#allocation11 + $0x3] sm:$0x1] %v1583_v5  ;;  %v587_v15 = vpack.c.bf16 %v1583_v5, %v1583_v5 }
 0x312   :  { %601 = vmatmul.bf16.vlgmr.msrb.gmra.mxu0 %v587_v15  ;;  %614 = vmatmul.bf16.vlgmr.msrb.gmra.mxu1 %v587_v15 }
 0x313   :  { %627 = vmatmul.bf16.vlgmr.msrb.gmra.mxu2 %v587_v15  ;;  %789 = vmatpush.bf16.msrb.mxu0 %v1345_v22 }
 0x314   :  { %848 = vmatpush.bf16.msrb.mxu1 %v1327_v3  ;;  %861 = vmatpush.bf16.msrb.mxu2 %v1329_v7 }
 0x317   :  { %790 = vmatpush.bf16.msrb.mxu0 %v1348_v27 }
 0x318   :  { %849 = vmatpush.bf16.msrb.mxu1 %v1332_v10  ;;  %862 = vmatpush.bf16.msrb.mxu2 %v1336_v11 }
 0x31b   :  { %791 = vmatpush.bf16.msrb.mxu0 %v1361_v37 }
 0x31c   :  { %850 = vmatpush.bf16.msrb.mxu1 %v1339_v17  ;;  %863 = vmatpush.bf16.msrb.mxu2 %v1343_v19  ;;  %v592_v17 = vld [vmem:[%s591_s27] sm:$0x7] }
 0x31d   :  { %v659_v26 = vrot.slane %v592_v17, 2 }
 0x31f   :  { %792 = vmatpush.bf16.msrb.mxu0 %v1371_v46 }
 0x320   :  { %851 = vmatpush.bf16.msrb.mxu1 %v1351_v28  ;;  %864 = vmatpush.bf16.msrb.mxu2 %v1355_v31 }
 0x323   :  { %793 = vmatpush.bf16.msrb.mxu0 %v1381_v55 }
 0x324   :  { %852 = vmatpush.bf16.msrb.mxu1 %v1364_v38  ;;  %865 = vmatpush.bf16.msrb.mxu2 %v1368_v41 }
 0x327   :  { %794 = vmatpush.bf16.msrb.mxu0 %v1391_v0 }
 0x328   :  { %853 = vmatpush.bf16.msrb.mxu1 %v1374_v47  ;;  %866 = vmatpush.bf16.msrb.mxu2 %v1378_v50 }
 0x32b   :  { %795 = vmatpush.bf16.msrb.mxu0 %v1405_v9 }
 0x32c   :  { %854 = vmatpush.bf16.msrb.mxu1 %v1384_v56  ;;  %867 = vmatpush.bf16.msrb.mxu2 %v1388_v59 }
 0x32f   :  { %796 = vmatpush.bf16.msrb.mxu0 %v1414_v14 }
 0x330   :  { %855 = vmatpush.bf16.msrb.mxu1 %v1394_v1  ;;  %868 = vmatpush.bf16.msrb.mxu2 %v1400_v6 }
 0x38f   :  { %v602_v3 = vpop.f32.mrf.mxu0  ;;  %v615_v7 = vpop.f32.mrf.mxu1 }
 0x390   :  { %v616_v10 = vadd.f32 %v615_v7, %v1472_v18  ;;  %v603_v11 = vadd.f32 %v602_v3, %v1470_v16 }
 0x392   :  { %v634_v19 = vrot.slane %v616_v10, 7 }
 0x394   :  { %v635_v28 = vsel %vm295_vm0, %v603_v11, %v634_v19 }
 0x395   :  { %v637_v31 = vadd.f32 %v635_v28, %v592_v17 }
 0x396   :  { %v628_v38 = vpop.f32.mrf.mxu2 }
 0x397   :  { %v1068_v41 = vmul.f32 -1.442695, %v637_v31  ;;  %v604_v47 = vpop.f32.mrf.mxu0  ;;  %v617_v50 = vpop.f32.mrf.mxu1  ;;  %v629_v24 = vadd.f32 %v628_v38, %v1477_v44 }
 0x399   :  { %1134 = vpow2.f32 %v1068_v41 }
 0x39e   :  { %v630_v56 = vpop.f32.mrf.mxu2 }
 0x39f   :  { %v1135_v59 = vpop.eup %1134 }
 0x3a0   :  { %v641_v1 = vadd.f32 1.0, %v1135_v59 }
 0x3a2   :  { %1136 = vrcp.f32 %v641_v1  ;;  %v653_v13 = vand.u32 2147483648, %v641_v1  ;;  %v651_v20 = vand.u32 2147483647, %v641_v1  ;;  %vm647_vm3 = vweird.f32 %v641_v1 }
 0x3a4   :  { %v654_v23 = vor.u32 1.1754944e-38, %v653_v13  ;;  %vm652_vm5 = vcmp.eq.f32.partialorder %v651_v20, 8.507059e+37 }
 0x3a8   :  { %v1137_v6 = vpop.eup %1136 }
 0x3a9   :  { %v643_v8 = vmul.f32 %v1137_v6, %v641_v1  ;;  %vm648_vm2 = vweird.f32 %v1137_v6 }
 0x3aa   :  { %vm649_vm4 = vmor %vm647_vm3, %vm648_vm2 }
 0x3ab   :  { %v644_v12 = vsub.f32 1.0, %v643_v8  ;;  %v762_v8 = vld [vmem:[%s761_s7] sm:$0x7] }
 0x3ad   :  { %v645_v2 = vmul.f32 %v1137_v6, %v644_v12 }
 0x3af   :  { %v646_v21 = vadd.f32 %v1137_v6, %v645_v2 }
 0x3b1   :  { %v650_v25 = vsel %vm649_vm4, %v1137_v6, %v646_v21 }
 0x3b2   :  { %v655_v29 = vsel %vm652_vm5, %v654_v23, %v650_v25 }
 0x3b3   :  { %v657_v30 = vmul.f32 %v655_v29, %v629_v24  ;;  %v664_v33 = vrot.slane %v655_v29, 1 }
 0x3b5   :  { %v661_v32 = vadd.f32 %v659_v26, %v657_v30  ;;  %v666_v34 = vsub.f32 1.0, %v664_v33  ;;  %v668_v39 = vmul.f32 %v664_v33, %v1583_v5 }
 0x3b7   :  { %1138 = vtanh.f32 %v661_v32 }
 0x3bd   :  { %v1139_v35 = vpop.eup %1138 }
 0x3be   :  { %v667_v36 = vmul.f32 %v1139_v35, %v666_v34 }
 0x3c0   :  { %v669_v40 = vadd.f32 %v668_v39, %v667_v36 }
 0x3c2   :  { %671 = vst [vmem:[#allocation11 + $0x4] sm:$0x1] %v669_v40  ;;  %v672_v42 = vpack.c.bf16 %v669_v40, %v669_v40 }
 0x3c4   :  { %686 = vmatmul.bf16.vlgmr.msrb.gmra.mxu3 %v672_v42  ;;  %699 = vmatmul.bf16.vlgmr.msra.gmra.mxu0 %v672_v42 }
 0x3c5   :  { %712 = vmatmul.bf16.vlgmr.msra.gmra.mxu1 %v672_v42  ;;  %874 = vmatpush.bf16.msrb.mxu3 %v1345_v22 }
 0x3c9   :  { %875 = vmatpush.bf16.msrb.mxu3 %v1348_v27 }
 0x3cd   :  { %876 = vmatpush.bf16.msrb.mxu3 %v1361_v37  ;;  %v677_v37 = vld [vmem:[%s676_s29] sm:$0x7] }
 0x3ce   :  { %v744_v3 = vrot.slane %v677_v37, 2 }
 0x3d1   :  { %877 = vmatpush.bf16.msrb.mxu3 %v1371_v46 }
 0x3d5   :  { %878 = vmatpush.bf16.msrb.mxu3 %v1381_v55 }
 0x3d9   :  { %879 = vmatpush.bf16.msrb.mxu3 %v1391_v0 }
 0x3dd   :  { %880 = vmatpush.bf16.msrb.mxu3 %v1405_v9 }
 0x3e1   :  { %881 = vmatpush.bf16.msrb.mxu3 %v1414_v14 }
 0x441   :  { %v700_v43 = vpop.f32.mrf.mxu0 }
 0x442   :  { %v713_v45 = vpop.f32.mrf.mxu1  ;;  %v701_v22 = vadd.f32 %v700_v43, %v1472_v18  ;;  %v829_v43 = vrot.slane %v762_v8, 2 }
 0x443   :  { %v714_v5 = vadd.f32 %v713_v45, %v1477_v44 }
 0x444   :  { %v719_v27 = vrot.slane %v701_v22, 7 }
 0x447   :  { %v687_v48 = vpop.f32.mrf.mxu3 }
 0x448   :  { %v688_v46 = vadd.f32 %v687_v48, %v1470_v16 }
 0x449   :  { %v702_v49 = vpop.f32.mrf.mxu0 }
 0x44a   :  { %v720_v55 = vsel %vm295_vm0, %v688_v46, %v719_v27  ;;  %v715_v0 = vpop.f32.mrf.mxu1 }
 0x44b   :  { %v722_v51 = vadd.f32 %v720_v55, %v677_v37 }
 0x44d   :  { %v1070_v9 = vmul.f32 -1.442695, %v722_v51 }
 0x44f   :  { %1140 = vpow2.f32 %v1070_v9  ;;  %v689_v14 = vpop.f32.mrf.mxu3 }
 0x455   :  { %v1141_v52 = vpop.eup %1140 }
 0x456   :  { %v726_v53 = vadd.f32 1.0, %v1141_v52 }
 0x458   :  { %1142 = vrcp.f32 %v726_v53  ;;  %v738_v60 = vand.u32 2147483648, %v726_v53  ;;  %v736_v62 = vand.u32 2147483647, %v726_v53  ;;  %vm732_vm7 = vweird.f32 %v726_v53 }
 0x45a   :  { %v739_v4 = vor.u32 1.1754944e-38, %v738_v60  ;;  %vm737_vm9 = vcmp.eq.f32.partialorder %v736_v62, 8.507059e+37 }
 0x45e   :  { %v1143_v54 = vpop.eup %1142 }
 0x45f   :  { %v728_v57 = vmul.f32 %v1143_v54, %v726_v53  ;;  %vm733_vm6 = vweird.f32 %v1143_v54 }
 0x460   :  { %vm734_vm8 = vmor %vm732_vm7, %vm733_vm6 }
 0x461   :  { %v729_v58 = vsub.f32 1.0, %v728_v57 }
 0x463   :  { %v730_v61 = vmul.f32 %v1143_v54, %v729_v58  ;;  %v847_v58 = vld [vmem:[%s846_s2] sm:$0x7] }
 0x465   :  { %v731_v63 = vadd.f32 %v1143_v54, %v730_v61 }
 0x467   :  { %v735_v15 = vsel %vm734_vm8, %v1143_v54, %v731_v63 }
 0x468   :  { %v740_v7 = vsel %vm737_vm9, %v739_v4, %v735_v15 }
 0x469   :  { %v742_v10 = vmul.f32 %v740_v7, %v714_v5  ;;  %v749_v17 = vrot.slane %v740_v7, 1 }
 0x46b   :  { %v746_v11 = vadd.f32 %v744_v3, %v742_v10  ;;  %v751_v19 = vsub.f32 1.0, %v749_v17  ;;  %v753_v38 = vmul.f32 %v749_v17, %v669_v40 }
 0x46d   :  { %1144 = vtanh.f32 %v746_v11 }
 0x473   :  { %v1145_v28 = vpop.eup %1144 }
 0x474   :  { %v752_v31 = vmul.f32 %v1145_v28, %v751_v19 }
 0x476   :  { %v754_v41 = vadd.f32 %v753_v38, %v752_v31 }
 0x478   :  { %756 = vst [vmem:[#allocation11 + $0x5] sm:$0x1] %v754_v41  ;;  %v757_v47 = vpack.c.bf16 %v754_v41, %v754_v41 }
 0x47a   :  { %771 = vmatmul.bf16.vlgmr.msra.gmra.mxu2 %v757_v47  ;;  %784 = vmatmul.bf16.vlgmr.msra.gmra.mxu3 %v757_v47 }
 0x47b   :  { %797 = vmatmul.bf16.vlgmr.msrb.gmra.mxu0 %v757_v47 }
 0x4f8   :  { %v798_v50 = vpop.f32.mrf.mxu0 }
 0x4f9   :  { %v799_v40 = vadd.f32 %v798_v50, %v1477_v44 }
 0x4fd   :  { %v772_v56 = vpop.f32.mrf.mxu2  ;;  %v785_v59 = vpop.f32.mrf.mxu3 }
 0x4fe   :  { %v786_v1 = vadd.f32 %v785_v59, %v1472_v18  ;;  %v773_v6 = vadd.f32 %v772_v56, %v1470_v16 }
 0x500   :  { %v804_v12 = vrot.slane %v786_v1, 7  ;;  %v800_v13 = vpop.f32.mrf.mxu0 }
 0x502   :  { %v805_v2 = vsel %vm295_vm0, %v773_v6, %v804_v12 }
 0x503   :  { %v807_v20 = vadd.f32 %v805_v2, %v762_v8 }
 0x505   :  { %v1072_v21 = vmul.f32 -1.442695, %v807_v20  ;;  %v774_v23 = vpop.f32.mrf.mxu2  ;;  %v787_v24 = vpop.f32.mrf.mxu3 }
 0x507   :  { %1146 = vpow2.f32 %v1072_v21 }
 0x50d   :  { %v1147_v25 = vpop.eup %1146 }
 0x50e   :  { %v811_v26 = vadd.f32 1.0, %v1147_v25 }
 0x510   :  { %1148 = vrcp.f32 %v811_v26  ;;  %v823_v33 = vand.u32 2147483648, %v811_v26  ;;  %v821_v35 = vand.u32 2147483647, %v811_v26  ;;  %vm817_vm11 = vweird.f32 %v811_v26 }
 0x512   :  { %v824_v39 = vor.u32 1.1754944e-38, %v823_v33  ;;  %vm822_vm13 = vcmp.eq.f32.partialorder %v821_v35, 8.507059e+37 }
 0x516   :  { %v1149_v29 = vpop.eup %1148 }
 0x517   :  { %v813_v30 = vmul.f32 %v1149_v29, %v811_v26  ;;  %vm818_vm10 = vweird.f32 %v1149_v29 }
 0x518   :  { %vm819_vm12 = vmor %vm817_vm11, %vm818_vm10 }
 0x519   :  { %v814_v32 = vsub.f32 1.0, %v813_v30 }
 0x51b   :  { %v815_v34 = vmul.f32 %v1149_v29, %v814_v32 }
 0x51d   :  { %v816_v36 = vadd.f32 %v1149_v29, %v815_v34 }
 0x51f   :  { %v820_v42 = vsel %vm819_vm12, %v1149_v29, %v816_v36 }
 0x520   :  { %v825_v45 = vsel %vm822_vm13, %v824_v39, %v820_v42 }
 0x521   :  { %v827_v22 = vmul.f32 %v825_v45, %v799_v40  ;;  %v834_v27 = vrot.slane %v825_v45, 1 }
 0x523   :  { %v831_v48 = vadd.f32 %v829_v43, %v827_v22  ;;  %v836_v37 = vsub.f32 1.0, %v834_v27  ;;  %v838_v55 = vmul.f32 %v834_v27, %v754_v41  ;;  %v914_v41 = vrot.slane %v847_v58, 2 }
 0x525   :  { %1150 = vtanh.f32 %v831_v48 }
 0x52b   :  { %v1151_v46 = vpop.eup %1150 }
 0x52c   :  { %v837_v49 = vmul.f32 %v1151_v46, %v836_v37 }
 0x52e   :  { %v839_v0 = vadd.f32 %v838_v55, %v837_v49 }
 0x530   :  { %841 = vst [vmem:[#allocation11 + $0x6] sm:$0x1] %v839_v0  ;;  %v842_v51 = vpack.c.bf16 %v839_v0, %v839_v0 }
 0x532   :  { %856 = vmatmul.bf16.vlgmr.msrb.gmra.mxu1 %v842_v51  ;;  %869 = vmatmul.bf16.vlgmr.msrb.gmra.mxu2 %v842_v51 }
 0x533   :  { %882 = vmatmul.bf16.vlgmr.msrb.gmra.mxu3 %v842_v51 }
 0x5af   :  { %v857_v9 = vpop.f32.mrf.mxu1 }
 0x5b0   :  { %v858_v57 = vadd.f32 %v857_v9, %v1470_v16 }
 0x5b5   :  { %v870_v14 = vpop.f32.mrf.mxu2 }
 0x5b6   :  { %v871_v52 = vadd.f32 %v870_v14, %v1472_v18  ;;  %v883_v53 = vpop.f32.mrf.mxu3 }
 0x5b7   :  { %v859_v54 = vpop.f32.mrf.mxu1  ;;  %v884_v31 = vadd.f32 %v883_v53, %v1477_v44 }
 0x5b8   :  { %v889_v60 = vrot.slane %v871_v52, 7 }
 0x5ba   :  { %v890_v61 = vsel %vm295_vm0, %v858_v57, %v889_v60 }
 0x5bb   :  { %v892_v62 = vadd.f32 %v890_v61, %v847_v58 }
 0x5bd   :  { %v1074_v63 = vmul.f32 -1.442695, %v892_v62  ;;  %v872_v4 = vpop.f32.mrf.mxu2 }
 0x5be   :  { %v885_v5 = vpop.f32.mrf.mxu3 }
 0x5bf   :  { %1152 = vpow2.f32 %v1074_v63 }
 0x5c5   :  { %v1153_v15 = vpop.eup %1152 }
 0x5c6   :  { %v896_v3 = vadd.f32 1.0, %v1153_v15 }
 0x5c8   :  { %1154 = vrcp.f32 %v896_v3  ;;  %v908_v11 = vand.u32 2147483648, %v896_v3  ;;  %v906_v16 = vand.u32 2147483647, %v896_v3  ;;  %vm902_vm15 = vweird.f32 %v896_v3 }
 0x5ca   :  { %v909_v28 = vor.u32 1.1754944e-38, %v908_v11  ;;  %vm907_vm0 = vcmp.eq.f32.partialorder %v906_v16, 8.507059e+37 }
 0x5ce   :  { %v1155_v7 = vpop.eup %1154 }
 0x5cf   :  { %v898_v10 = vmul.f32 %v1155_v7, %v896_v3  ;;  %vm903_vm14 = vweird.f32 %v1155_v7 }
 0x5d0   :  { %vm904_vm1 = vmor %vm902_vm15, %vm903_vm14 }
 0x5d1   :  { %v899_v18 = vsub.f32 1.0, %v898_v10 }
 0x5d3   :  { %v900_v17 = vmul.f32 %v1155_v7, %v899_v18 }
 0x5d5   :  { %v901_v19 = vadd.f32 %v1155_v7, %v900_v17 }
 0x5d7   :  { %v905_v38 = vsel %vm904_vm1, %v1155_v7, %v901_v19 }
 0x5d8   :  { %v910_v47 = vsel %vm907_vm0, %v909_v28, %v905_v38 }
 0x5d9   :  { %v912_v50 = vmul.f32 %v910_v47, %v884_v31  ;;  %v919_v59 = vrot.slane %v910_v47, 1 }
 0x5db   :  { %v916_v56 = vadd.f32 %v914_v41, %v912_v50  ;;  %v921_v1 = vsub.f32 1.0, %v919_v59  ;;  %v923_v12 = vmul.f32 %v919_v59, %v839_v0 }
 0x5dd   :  { %1156 = vtanh.f32 %v916_v56 }
 0x5e3   :  { %v1157_v6 = vpop.eup %1156 }
 0x5e4   :  { %v922_v8 = vmul.f32 %v1157_v6, %v921_v1 }
 0x5e6   :  { %v924_v44 = vadd.f32 %v923_v12, %v922_v8 }
 0x5e8   :  { %926 = vst [vmem:[#allocation11 + $0x7] sm:$0x1] %v924_v44 }
 0x5e9   :  { %927 = vst [vmem:[#allocation2] sm:$0x1] %v924_v44  ;;  %940 = dma.vmem_to_hbm [thread:$0]  %s933_s11, 128, %s935_s1, [#allocation7], %s1283_s3, %s1283_s3, %s1284_s4  }
 0x5ea   :  { %1272 = dma.done.wait [#allocation7], 128  }
 0x5eb   :  { %1273 = vsyncadd [#allocation7], 4294967168 }
 0x5ec   :  { %945 = vsyncpa [#allocation6], 1 }
 0x5ed   :  { %946 = vsyncpa [#allocation9], 1 }
 0x5ee   :  { %947 = vsyncpa [#allocation7], 1 }

</bundles_post_ra>
